<compile_context>
chip_gen: v7x
topology: tpu7x:2x2x1
jax: 0.10.0
libtpu: 0.0.40
codegen_flags: <defaults>
</compile_context>

<pallas_src>
import jax
import jax.numpy as jnp
from jax.experimental import pallas as pl
from jax.experimental.pallas import tpu as pltpu


def _mlp_kernel(x_ref, w1_ref, b1_ref, w2_ref, b2_ref, o_ref):
    # fc1 + ReLU (f32 accumulation on the MXU)
    h = jnp.dot(x_ref[...], w1_ref[...], preferred_element_type=jnp.float32)
    h = jnp.maximum(h + b1_ref[...], 0.0)          # b1 is (1, hidden) -> broadcasts over rows
    # dropout(p=0.1): identity in eval/inference mode
    # TODO(synk): training-mode dropout (pltpu.prng_seed + prng_random_bits masking) not emitted.
    # fc2 + ReLU
    h = h.astype(w2_ref.dtype)                      # keep second matmul in the compute dtype
    y = jnp.dot(h, w2_ref[...], preferred_element_type=jnp.float32)
    y = jnp.maximum(y + b2_ref[...], 0.0)
    # Lane-dense store: write (out_dim, tb) so the fast (lane) axis is the 128-multiple batch
    # tile, not the 16-wide feature dim (avoids masked vst.msk partial stores).
    o_ref[...] = y.T.astype(o_ref.dtype)


def embedding_module_forward(x, w1, b1, w2, b2, *, batch_tile=1024, compute_dtype=None):
    """x: (B, input_dim); w1: (input_dim, hidden); b1: (hidden,);
       w2: (hidden, hidden//2); b2: (hidden//2,). Returns (B, hidden//2) in x.dtype.

    batch_tile: rows per grid step (rounded up to a multiple of 128). B is zero-padded
                to a multiple of the tile; padding is sliced away on return.
    compute_dtype: optionally cast x/w1/w2 (e.g. jnp.bfloat16) to halve HBM read traffic;
                   accumulation stays f32.
    """
    B, in_dim = x.shape
    hid = w1.shape[1]
    out_dim = w2.shape[1]
    out_dtype = x.dtype

    # Tile size: multiple of 128 lanes for the transposed output slab.
    tb = max(128, ((int(batch_tile) + 127) // 128) * 128)
    b_pad = ((B + tb - 1) // tb) * tb
    if b_pad != B:
        x = jnp.pad(x, ((0, b_pad - B), (0, 0)))
    n_tiles = b_pad // tb

    if compute_dtype is not None:
        x = x.astype(compute_dtype)
        w1 = w1.astype(compute_dtype)
        w2 = w2.astype(compute_dtype)

    # Biases stay f32; added after f32 accumulation.
    b1_2d = b1.reshape(1, hid).astype(jnp.float32)
    b2_2d = b2.reshape(1, out_dim).astype(jnp.float32)

    itemsize = jnp.dtype(x.dtype).itemsize
    flops = 2 * b_pad * (in_dim * hid + hid * out_dim)
    bytes_accessed = int(
        b_pad * in_dim * itemsize                               # x read
        + (in_dim * hid + hid * out_dim) * itemsize             # weights
        + (hid + out_dim) * 4                                   # biases
        + b_pad * out_dim * jnp.dtype(out_dtype).itemsize       # output write
    )

    out_t = pl.pallas_call(
        _mlp_kernel,
        out_shape=jax.ShapeDtypeStruct((out_dim, b_pad), out_dtype),
        grid_spec=pltpu.PrefetchScalarGridSpec(
            num_scalar_prefetch=0,
            grid=(n_tiles,),
            in_specs=[
                pl.BlockSpec((tb, in_dim), lambda i: (i, 0)),    # x tile (pipelined)
                pl.BlockSpec((in_dim, hid), lambda i: (0, 0)),   # w1 (resident)
                pl.BlockSpec((1, hid), lambda i: (0, 0)),        # b1 (resident)
                pl.BlockSpec((hid, out_dim), lambda i: (0, 0)),  # w2 (resident)
                pl.BlockSpec((1, out_dim), lambda i: (0, 0)),    # b2 (resident)
            ],
            out_specs=pl.BlockSpec((out_dim, tb), lambda i: (0, i)),  # transposed, lane-dense
        ),
        compiler_params=pltpu.CompilerParams(
            dimension_semantics=("parallel",)),
        cost_estimate=pl.CostEstimate(
            flops=flops, transcendentals=0, bytes_accessed=bytes_accessed),
    )(x, w1, b1_2d, w2, b2_2d)

    # Back to (B, out_dim); drop batch padding.
    return out_t.T[:B]


def _reference(x, w1, b1, w2, b2):
    return jnp.maximum(jnp.maximum(x @ w1 + b1, 0.0) @ w2 + b2, 0.0)


if __name__ == "__main__":
    # Small shapes consistent with the module: batch=8, input_dim=64, hidden_dim=32 -> out=16
    B, INPUT_DIM, HIDDEN_DIM = 8, 64, 32
    OUT_DIM = HIDDEN_DIM // 2

    key = jax.random.PRNGKey(0)
    kx, kw1, kb1, kw2, kb2, kx2 = jax.random.split(key, 6)

    x = jax.random.normal(kx, (B, INPUT_DIM), dtype=jnp.float32)
    lim1 = 1.0 / (INPUT_DIM ** 0.5)
    lim2 = 1.0 / (HIDDEN_DIM ** 0.5)
    w1 = jax.random.uniform(kw1, (INPUT_DIM, HIDDEN_DIM), jnp.float32, -lim1, lim1)
    b1 = jax.random.uniform(kb1, (HIDDEN_DIM,), jnp.float32, -lim1, lim1)
    w2 = jax.random.uniform(kw2, (HIDDEN_DIM, OUT_DIM), jnp.float32, -lim2, lim2)
    b2 = jax.random.uniform(kb2, (OUT_DIM,), jnp.float32, -lim2, lim2)

    # 1) Exact f32 path (single tile after padding).
    out = embedding_module_forward(x, w1, b1, w2, b2)
    jax.block_until_ready(out)
    ref = _reference(x, w1, b1, w2, b2)
    assert out.shape == (B, OUT_DIM)
    assert jnp.allclose(out, ref, atol=1e-5, rtol=1e-5)

    # 2) Multi-tile grid (4 steps) + bf16 inputs, checked against the f32 reference.
    B2 = 2048
    x2 = jax.random.normal(kx2, (B2, INPUT_DIM), dtype=jnp.float32)
    out2 = embedding_module_forward(x2, w1, b1, w2, b2,
                                    batch_tile=512, compute_dtype=jnp.bfloat16)
    jax.block_until_ready(out2)
    ref2 = _reference(x2, w1, b1, w2, b2)
    assert out2.shape == (B2, OUT_DIM)
    assert jnp.allclose(out2, ref2, atol=5e-2, rtol=5e-2)

    print("KERNEL_OK")
</pallas_src>

<mosaic_0001>
module attributes {stable_mosaic.version = 11 : i64} {
  func.func @_mlp_kernel(%arg0: i32, %arg1: memref<1024x64xf32, #tpu.memory_space<vmem>>, %arg2: memref<64x32xf32, #tpu.memory_space<vmem>>, %arg3: memref<1x32xf32, #tpu.memory_space<vmem>>, %arg4: memref<32x16xf32, #tpu.memory_space<vmem>>, %arg5: memref<1x16xf32, #tpu.memory_space<vmem>>, %arg6: memref<16x1024xf32, #tpu.memory_space<vmem>>) attributes {dimension_semantics = [#tpu.dimension_semantics<parallel>], iteration_bounds = array<i64: 1>, scalar_prefetch = 0 : i64, scratch_operands = 0 : i64, tpu.core_type = #tpu.core_type<tc>, window_params = [{transform_indices = @transform_0, window_bounds = array<i64: 1024, 64>}, {pipeline_mode = #tpu.pipeline_mode<synchronous>, transform_indices = @transform_1, window_bounds = array<i64: 64, 32>}, {pipeline_mode = #tpu.pipeline_mode<synchronous>, transform_indices = @transform_2, window_bounds = array<i64: 1, 32>}, {pipeline_mode = #tpu.pipeline_mode<synchronous>, transform_indices = @transform_3, window_bounds = array<i64: 32, 16>}, {pipeline_mode = #tpu.pipeline_mode<synchronous>, transform_indices = @transform_4, window_bounds = array<i64: 1, 16>}, {transform_indices = @transform_5, window_bounds = array<i64: 16, 1024>}]} {
    %c0 = arith.constant 0 : index
    %c0_0 = arith.constant 0 : index
    %0 = vector.load %arg1[%c0, %c0_0] : memref<1024x64xf32, #tpu.memory_space<vmem>>, vector<1024x64xf32>
    %c0_1 = arith.constant 0 : index
    %c0_2 = arith.constant 0 : index
    %1 = vector.load %arg2[%c0_1, %c0_2] : memref<64x32xf32, #tpu.memory_space<vmem>>, vector<64x32xf32>
    %cst = arith.constant dense<0.000000e+00> : vector<1024x32xf32>
    %2 = tpu.matmul %0, %1, %cst {dimension_numbers = #tpu.dot_dimension_numbers<[1], [0], [0], [1], [0, 0, 1, 1], [], []>} : vector<1024x64xf32>, vector<64x32xf32>, vector<1024x32xf32> -> vector<1024x32xf32>
    %c0_3 = arith.constant 0 : index
    %c0_4 = arith.constant 0 : index
    %3 = vector.load %arg3[%c0_3, %c0_4] : memref<1x32xf32, #tpu.memory_space<vmem>>, vector<1x32xf32>
    %4 = vector.broadcast %3 : vector<1x32xf32> to vector<1024x32xf32>
    %5 = arith.addf %2, %4 : vector<1024x32xf32>
    %cst_5 = arith.constant 0.000000e+00 : f32
    %6 = vector.broadcast %cst_5 : f32 to vector<1024x32xf32>
    %7 = arith.maximumf %5, %6 : vector<1024x32xf32>
    %c0_6 = arith.constant 0 : index
    %c0_7 = arith.constant 0 : index
    %8 = vector.load %arg4[%c0_6, %c0_7] : memref<32x16xf32, #tpu.memory_space<vmem>>, vector<32x16xf32>
    %cst_8 = arith.constant dense<0.000000e+00> : vector<1024x16xf32>
    %9 = tpu.matmul %7, %8, %cst_8 {dimension_numbers = #tpu.dot_dimension_numbers<[1], [0], [0], [1], [0, 0, 1, 1], [], []>} : vector<1024x32xf32>, vector<32x16xf32>, vector<1024x16xf32> -> vector<1024x16xf32>
    %c0_9 = arith.constant 0 : index
    %c0_10 = arith.constant 0 : index
    %10 = vector.load %arg5[%c0_9, %c0_10] : memref<1x16xf32, #tpu.memory_space<vmem>>, vector<1x16xf32>
    %11 = vector.broadcast %10 : vector<1x16xf32> to vector<1024x16xf32>
    %12 = arith.addf %9, %11 : vector<1024x16xf32>
    %cst_11 = arith.constant 0.000000e+00 : f32
    %13 = vector.broadcast %cst_11 : f32 to vector<1024x16xf32>
    %14 = arith.maximumf %12, %13 : vector<1024x16xf32>
    %15 = tpu.transpose %14, [1, 0] : vector<1024x16xf32> -> vector<16x1024xf32>
    %c0_12 = arith.constant 0 : index
    %c0_13 = arith.constant 0 : index
    %16 = vector.load %arg6[%c0_12, %c0_13] : memref<16x1024xf32, #tpu.memory_space<vmem>>, vector<16x1024xf32>
    tpu.vector_store %arg6[%c0_12, %c0_13], %15 {strides = array<i32>} : memref<16x1024xf32, #tpu.memory_space<vmem>>, vector<16x1024xf32>,
    return
  }
  func.func @transform_0(%arg0: i32) -> (i32, i32) {
    %c0_i32 = arith.constant 0 : i32
    %c0_i32_0 = arith.constant 0 : i32
    return %arg0, %c0_i32 : i32, i32
  }
  func.func @transform_1(%arg0: i32) -> (i32, i32) {
    %c0_i32 = arith.constant 0 : i32
    %c0_i32_0 = arith.constant 0 : i32
    %c0_i32_1 = arith.constant 0 : i32
    return %c0_i32, %c0_i32_0 : i32, i32
  }
  func.func @transform_2(%arg0: i32) -> (i32, i32) {
    %c0_i32 = arith.constant 0 : i32
    %c0_i32_0 = arith.constant 0 : i32
    %c0_i32_1 = arith.constant 0 : i32
    return %c0_i32, %c0_i32_0 : i32, i32
  }
  func.func @transform_3(%arg0: i32) -> (i32, i32) {
    %c0_i32 = arith.constant 0 : i32
    %c0_i32_0 = arith.constant 0 : i32
    %c0_i32_1 = arith.constant 0 : i32
    return %c0_i32, %c0_i32_0 : i32, i32
  }
  func.func @transform_4(%arg0: i32) -> (i32, i32) {
    %c0_i32 = arith.constant 0 : i32
    %c0_i32_0 = arith.constant 0 : i32
    %c0_i32_1 = arith.constant 0 : i32
    return %c0_i32, %c0_i32_0 : i32, i32
  }
  func.func @transform_5(%arg0: i32) -> (i32, i32) {
    %c0_i32 = arith.constant 0 : i32
    %c0_i32_0 = arith.constant 0 : i32
    return %c0_i32, %arg0 : i32, i32
  }
}

</mosaic_0001>

<bundles_post_ra>
// kernel: tpu_custom_call.1
= control target key start
LH: loop header
LB: loop body
LE: loop exit
PB: predicated region body
PF: predicated region fallthrough
CT: control target
= control target key end

     0   :  { %vm164_vm0 = vcmask 523264   ;;  %s4907_s0 = inlined_call_operand.vmem [shape: f32[1024,64], index: 0, kind: input, shape index: {}]   ;;  %s4908_s1 = inlined_call_operand.vmem [shape: f32[64,32], index: 1, kind: input, shape index: {}]   ;;  %s4909_s2 = inlined_call_operand.vmem [shape: f32[1,32], index: 2, kind: input, shape index: {}]   ;;  %s4910_s3 = inlined_call_operand.vmem [shape: f32[32,16], index: 3, kind: input, shape index: {}]   ;;  %s4911_s4 = inlined_call_operand.vmem [shape: f32[1,16], index: 4, kind: input, shape index: {}]   ;;  %s4912_s5 = inlined_call_operand.hbm [shape: f32[16,1024], index: 5, kind: output, shape index: {}]  }
   0x1   :  { %v149_v0 = vld [vmem:[%s4908_s1] sm:$0xff]  ;;  %v150_v1 = vld [vmem:[%s4908_s1 + $0x8] sm:$0xff]  ;;  %v151_v2 = vld [vmem:[%s4908_s1 + $0x10] sm:$0xff] }
   0x2   :  { %v3833_v3 = vpack.c.bf16 %v150_v1, %v149_v0  ;;  %v152_v4 = vld [vmem:[%s4908_s1 + $0x18] sm:$0xff]  ;;  %v153_v6 = vld [vmem:[%s4908_s1 + $0x20] sm:$0xff]  ;;  %v154_v7 = vld [vmem:[%s4908_s1 + $0x28] sm:$0xff] }
   0x3   :  { %v3837_v5 = vpack.c.bf16 %v152_v4, %v151_v2  ;;  %v21_v8 = vld [vmem:[%s4907_s0] sm:$0xff]  ;;  %v3841_v9 = vpack.c.bf16 %v154_v7, %v153_v6  ;;  %v155_v10 = vld [vmem:[%s4908_s1 + $0x30] sm:$0xff]  ;;  %v156_v11 = vld [vmem:[%s4908_s1 + $0x38] sm:$0xff] }
   0x4   :  { %3834 = vmatprep.subr.bf16.mxu0 %v3833_v3  ;;  %3441 = vmatprep.mubr.msk.f32.mxu0 %vm164_vm0, %v21_v8  ;;  %v3845_v12 = vpack.c.bf16 %v156_v11, %v155_v10  ;;  %v22_v13 = vld [vmem:[%s4907_s0 + $0x8] sm:$0xff]  ;;  %v23_v14 = vld [vmem:[%s4907_s0 + $0x10] sm:$0xff]  ;;  %v24_v15 = vld [vmem:[%s4907_s0 + $0x18] sm:$0xff] }
   0x5   :  { %3836 = vmatpush3.bf16.msra.mxu0 %v3833_v3  ;;  %v25_v16 = vld [vmem:[%s4907_s0 + $0x20] sm:$0xff]  ;;  %v26_v17 = vld [vmem:[%s4907_s0 + $0x28] sm:$0xff]  ;;  %v27_v18 = vld [vmem:[%s4907_s0 + $0x30] sm:$0xff] }
   0x6   :  { %3838 = vmatprep.subr.bf16.mxu0 %v3837_v5 }
   0x9   :  { %3840 = vmatpush3.bf16.msra.mxu0 %v3837_v5 }
   0xa   :  { %3842 = vmatprep.subr.bf16.mxu0 %v3841_v9 }
   0xd   :  { %3844 = vmatpush3.bf16.msra.mxu0 %v3841_v9 }
   0xe   :  { %3846 = vmatprep.subr.bf16.mxu0 %v3845_v12 }
  0x11   :  { %3848 = vmatpush3.bf16.msra.mxu0 %v3845_v12 }
  0x14   :  { %3442 = vmatmul.mubr.msk.f32.vlgmr.msra.gmra.mrb[0].mxu0 %vm164_vm0, %v22_v13 }
  0x15   :  { %3444 = vmatprep.mubr.msk.f32.mxu0 %vm164_vm0, %v23_v14 }
  0x18   :  { %3445 = vmatmul.mubr.msk.f32.gmra.mrb[2].mxu0 %vm164_vm0, %v24_v15 }
  0x19   :  { %3447 = vmatprep.mubr.msk.f32.mxu0 %vm164_vm0, %v25_v16 }
  0x1a   :  { %10 = vsyncpa [#allocation3], 0  ;;  %v28_v19 = vld [vmem:[%s4907_s0 + $0x38] sm:$0xff]  ;;  %v29_v20 = vld [vmem:[%s4907_s0 + $0x40] sm:$0xff]  ;;  %vm1393_vm1 = vcmask 261120  }
  0x1b   :  { %v30_v21 = vld [vmem:[%s4907_s0 + $0x48] sm:$0xff]  ;;  %v31_v22 = vld [vmem:[%s4907_s0 + $0x50] sm:$0xff]  ;;  %v32_v23 = vld [vmem:[%s4907_s0 + $0x58] sm:$0xff] }
  0x1c   :  { %3448 = vmatmul.mubr.msk.f32.gmra.mrb[4].mxu0 %vm164_vm0, %v26_v17  ;;  %v33_v24 = vld [vmem:[%s4907_s0 + $0x60] sm:$0xff]  ;;  %v34_v25 = vld [vmem:[%s4907_s0 + $0x68] sm:$0xff]  ;;  %v35_v26 = vld [vmem:[%s4907_s0 + $0x70] sm:$0xff] }
  0x1d   :  { %3450 = vmatprep.mubr.msk.f32.mxu0 %vm164_vm0, %v27_v18  ;;  %v36_v27 = vld [vmem:[%s4907_s0 + $0x78] sm:$0xff]  ;;  %v37_v28 = vld [vmem:[%s4907_s0 + $0x80] sm:$0xff]  ;;  %v38_v29 = vld [vmem:[%s4907_s0 + $0x88] sm:$0xff] }
  0x1e   :  { %v39_v30 = vld [vmem:[%s4907_s0 + $0x90] sm:$0xff]  ;;  %v40_v31 = vld [vmem:[%s4907_s0 + $0x98] sm:$0xff]  ;;  %v41_v32 = vld [vmem:[%s4907_s0 + $0xa0] sm:$0xff] }
  0x1f   :  { %v42_v33 = vld [vmem:[%s4907_s0 + $0xa8] sm:$0xff]  ;;  %v43_v34 = vld [vmem:[%s4907_s0 + $0xb0] sm:$0xff]  ;;  %v44_v35 = vld [vmem:[%s4907_s0 + $0xb8] sm:$0xff] }
  0x20   :  { %3451 = vmatmul.mubr.msk.f32.gmra.mrb[6].mxu0 %vm164_vm0, %v28_v19  ;;  %v45_v36 = vld [vmem:[%s4907_s0 + $0xc0] sm:$0xff]  ;;  %v46_v37 = vld [vmem:[%s4907_s0 + $0xc8] sm:$0xff]  ;;  %v47_v38 = vld [vmem:[%s4907_s0 + $0xd0] sm:$0xff] }
  0x21   :  { %3453 = vmatprep.mubr.msk.f32.mxu0 %vm164_vm0, %v29_v20  ;;  %v48_v39 = vld [vmem:[%s4907_s0 + $0xd8] sm:$0xff]  ;;  %v49_v40 = vld [vmem:[%s4907_s0 + $0xe0] sm:$0xff]  ;;  %v50_v41 = vld [vmem:[%s4907_s0 + $0xe8] sm:$0xff] }
  0x22   :  { %v51_v42 = vld [vmem:[%s4907_s0 + $0xf0] sm:$0xff]  ;;  %v52_v43 = vld [vmem:[%s4907_s0 + $0xf8] sm:$0xff]  ;;  %v53_v44 = vld [vmem:[%s4907_s0 + $0x100] sm:$0xff] }
  0x23   :  { %v54_v45 = vld [vmem:[%s4907_s0 + $0x108] sm:$0xff]  ;;  %v55_v46 = vld [vmem:[%s4907_s0 + $0x110] sm:$0xff]  ;;  %v56_v47 = vld [vmem:[%s4907_s0 + $0x118] sm:$0xff] }
  0x24   :  { %3454 = vmatmul.mubr.msk.f32.gmra.mrb[8].mxu0 %vm164_vm0, %v30_v21  ;;  %v57_v48 = vld [vmem:[%s4907_s0 + $0x120] sm:$0xff]  ;;  %v58_v49 = vld [vmem:[%s4907_s0 + $0x128] sm:$0xff]  ;;  %v59_v50 = vld [vmem:[%s4907_s0 + $0x130] sm:$0xff] }
  0x25   :  { %3456 = vmatprep.mubr.msk.f32.mxu0 %vm164_vm0, %v31_v22  ;;  %v60_v51 = vld [vmem:[%s4907_s0 + $0x138] sm:$0xff]  ;;  %v61_v52 = vld [vmem:[%s4907_s0 + $0x140] sm:$0xff]  ;;  %v62_v53 = vld [vmem:[%s4907_s0 + $0x148] sm:$0xff] }
  0x26   :  { %v63_v54 = vld [vmem:[%s4907_s0 + $0x150] sm:$0xff]  ;;  %v1382_v55 = vld [vmem:[%s4910_s3] sm:$0xff]  ;;  %v1383_v56 = vld [vmem:[%s4910_s3 + $0x8] sm:$0xff] }
  0x27   :  { %v3849_v57 = vpack.c.bf16 %v1383_v56, %v1382_v55  ;;  %v64_v58 = vld [vmem:[%s4907_s0 + $0x158] sm:$0xff]  ;;  %v65_v59 = vld [vmem:[%s4907_s0 + $0x160] sm:$0xff]  ;;  %v1384_v60 = vld [vmem:[%s4910_s3 + $0x10] sm:$0xff] }
  0x28   :  { %3457 = vmatmul.mubr.msk.f32.gmra.mrb[10].mxu0 %vm164_vm0, %v32_v23  ;;  %v1385_v61 = vld [vmem:[%s4910_s3 + $0x18] sm:$0xff]  ;;  %v66_v62 = vld [vmem:[%s4907_s0 + $0x168] sm:$0xff]  ;;  %v67_v0 = vld [vmem:[%s4907_s0 + $0x170] sm:$0xff] }
  0x29   :  { %3459 = vmatprep.mubr.msk.f32.mxu0 %vm164_vm0, %v33_v24  ;;  %3850 = vmatprep.subr.bf16.mxu1 %v3849_v57  ;;  %v3853_v63 = vpack.c.bf16 %v1385_v61, %v1384_v60  ;;  %v68_v1 = vld [vmem:[%s4907_s0 + $0x178] sm:$0xff]  ;;  %v69_v2 = vld [vmem:[%s4907_s0 + $0x180] sm:$0xff]  ;;  %v70_v3 = vld [vmem:[%s4907_s0 + $0x188] sm:$0xff] }
  0x2a   :  { %3852 = vmatpush3.bf16.msra.mxu1 %v3849_v57  ;;  %v71_v4 = vld [vmem:[%s4907_s0 + $0x190] sm:$0xff]  ;;  %v72_v5 = vld [vmem:[%s4907_s0 + $0x198] sm:$0xff]  ;;  %v73_v6 = vld [vmem:[%s4907_s0 + $0x1a0] sm:$0xff] }
  0x2b   :  { %3854 = vmatprep.subr.bf16.mxu1 %v3853_v63  ;;  %v74_v7 = vld [vmem:[%s4907_s0 + $0x1a8] sm:$0xff]  ;;  %v75_v8 = vld [vmem:[%s4907_s0 + $0x1b0] sm:$0xff]  ;;  %v76_v9 = vld [vmem:[%s4907_s0 + $0x1b8] sm:$0xff] }
  0x2c   :  { %3460 = vmatmul.mubr.msk.f32.gmra.mrb[12].mxu0 %vm164_vm0, %v34_v25  ;;  %v77_v10 = vld [vmem:[%s4907_s0 + $0x1c0] sm:$0xff]  ;;  %v78_v11 = vld [vmem:[%s4907_s0 + $0x1c8] sm:$0xff]  ;;  %v79_v12 = vld [vmem:[%s4907_s0 + $0x1d0] sm:$0xff] }
  0x2d   :  { %3462 = vmatprep.mubr.msk.f32.mxu0 %vm164_vm0, %v35_v26  ;;  %v80_v13 = vld [vmem:[%s4907_s0 + $0x1d8] sm:$0xff]  ;;  %v81_v14 = vld [vmem:[%s4907_s0 + $0x1e0] sm:$0xff]  ;;  %v82_v15 = vld [vmem:[%s4907_s0 + $0x1e8] sm:$0xff] }
  0x2e   :  { %3856 = vmatpush3.bf16.msra.mxu1 %v3853_v63  ;;  %v83_v16 = vld [vmem:[%s4907_s0 + $0x1f0] sm:$0xff]  ;;  %v84_v17 = vld [vmem:[%s4907_s0 + $0x1f8] sm:$0xff]  ;;  %v85_v18 = vld [vmem:[%s4907_s0 + $0x200] sm:$0xff] }
  0x2f   :  { %v86_v19 = vld [vmem:[%s4907_s0 + $0x208] sm:$0xff]  ;;  %v87_v20 = vld [vmem:[%s4907_s0 + $0x210] sm:$0xff]  ;;  %v88_v21 = vld [vmem:[%s4907_s0 + $0x218] sm:$0xff] }
  0x30   :  { %3463 = vmatmul.mubr.msk.f32.gmra.mrb[14].mxu0 %vm164_vm0, %v36_v27  ;;  %v89_v22 = vld [vmem:[%s4907_s0 + $0x220] sm:$0xff]  ;;  %v90_v23 = vld [vmem:[%s4907_s0 + $0x228] sm:$0xff]  ;;  %v91_v24 = vld [vmem:[%s4907_s0 + $0x230] sm:$0xff] }
  0x31   :  { %3465 = vmatprep.mubr.msk.f32.mxu0 %vm164_vm0, %v37_v28  ;;  %v92_v25 = vld [vmem:[%s4907_s0 + $0x238] sm:$0xff]  ;;  %v93_v26 = vld [vmem:[%s4907_s0 + $0x240] sm:$0xff]  ;;  %v94_v27 = vld [vmem:[%s4907_s0 + $0x248] sm:$0xff] }
  0x32   :  { %v95_v28 = vld [vmem:[%s4907_s0 + $0x250] sm:$0xff]  ;;  %v122_v55 = vld [vmem:[%s4907_s0 + $0x328] sm:$0xff]  ;;  %v124_v57 = vld [vmem:[%s4907_s0 + $0x338] sm:$0xff] }
  0x33   :  { %v123_v56 = vld [vmem:[%s4907_s0 + $0x330] sm:$0xff]  ;;  %v4385_v61 = vld [vmem:[%s4909_s2] ss:$0 sm:$0xff] }
  0x34   :  { %3466 = vmatmul.mubr.msk.f32.gmra.mrb[16].mxu0 %vm164_vm0, %v38_v29  ;;  %v96_v29 = vld [vmem:[%s4907_s0 + $0x258] sm:$0xff]  ;;  %v127_v60 = vld [vmem:[%s4907_s0 + $0x350] sm:$0xff]  ;;  %v129_v63 = vld [vmem:[%s4907_s0 + $0x360] sm:$0xff] }
  0x35   :  { %3468 = vmatprep.mubr.msk.f32.mxu0 %vm164_vm0, %v39_v30  ;;  %v97_v30 = vld [vmem:[%s4907_s0 + $0x260] sm:$0xff] }
  0x38   :  { %3469 = vmatmul.mubr.msk.f32.gmra.mrb[18].mxu0 %vm164_vm0, %v40_v31  ;;  %v98_v31 = vld [vmem:[%s4907_s0 + $0x268] sm:$0xff] }
  0x39   :  { %3471 = vmatprep.mubr.msk.f32.mxu0 %vm164_vm0, %v41_v32  ;;  %v99_v32 = vld [vmem:[%s4907_s0 + $0x270] sm:$0xff] }
  0x3c   :  { %3472 = vmatmul.mubr.msk.f32.gmra.mrb[20].mxu0 %vm164_vm0, %v42_v33  ;;  %v100_v33 = vld [vmem:[%s4907_s0 + $0x278] sm:$0xff] }
  0x3d   :  { %3474 = vmatprep.mubr.msk.f32.mxu0 %vm164_vm0, %v43_v34  ;;  %v101_v34 = vld [vmem:[%s4907_s0 + $0x280] sm:$0xff] }
  0x40   :  { %3475 = vmatmul.mubr.msk.f32.gmra.mrb[22].mxu0 %vm164_vm0, %v44_v35  ;;  %v102_v35 = vld [vmem:[%s4907_s0 + $0x288] sm:$0xff] }
  0x41   :  { %3477 = vmatprep.mubr.msk.f32.mxu0 %vm164_vm0, %v45_v36  ;;  %v103_v36 = vld [vmem:[%s4907_s0 + $0x290] sm:$0xff] }
  0x44   :  { %3478 = vmatmul.mubr.msk.f32.gmra.mrb[24].mxu0 %vm164_vm0, %v46_v37  ;;  %v104_v37 = vld [vmem:[%s4907_s0 + $0x298] sm:$0xff] }
  0x45   :  { %3480 = vmatprep.mubr.msk.f32.mxu0 %vm164_vm0, %v47_v38  ;;  %v105_v38 = vld [vmem:[%s4907_s0 + $0x2a0] sm:$0xff] }
  0x48   :  { %3481 = vmatmul.mubr.msk.f32.gmra.mrb[26].mxu0 %vm164_vm0, %v48_v39  ;;  %v106_v39 = vld [vmem:[%s4907_s0 + $0x2a8] sm:$0xff] }
  0x49   :  { %3483 = vmatprep.mubr.msk.f32.mxu0 %vm164_vm0, %v49_v40  ;;  %v107_v40 = vld [vmem:[%s4907_s0 + $0x2b0] sm:$0xff] }
  0x4c   :  { %3484 = vmatmul.mubr.msk.f32.gmra.mrb[28].mxu0 %vm164_vm0, %v50_v41  ;;  %v108_v41 = vld [vmem:[%s4907_s0 + $0x2b8] sm:$0xff] }
  0x4d   :  { %3486 = vmatprep.mubr.msk.f32.mxu0 %vm164_vm0, %v51_v42  ;;  %v109_v42 = vld [vmem:[%s4907_s0 + $0x2c0] sm:$0xff] }
  0x50   :  { %3487 = vmatmul.mubr.msk.f32.gmra.mrb[30].mxu0 %vm164_vm0, %v52_v43  ;;  %v110_v43 = vld [vmem:[%s4907_s0 + $0x2c8] sm:$0xff] }
  0x51   :  { %3489 = vmatprep.mubr.msk.f32.mxu0 %vm164_vm0, %v53_v44  ;;  %v111_v44 = vld [vmem:[%s4907_s0 + $0x2d0] sm:$0xff] }
  0x54   :  { %3490 = vmatmul.mubr.msk.f32.gmra.mrb[32].mxu0 %vm164_vm0, %v54_v45  ;;  %v112_v45 = vld [vmem:[%s4907_s0 + $0x2d8] sm:$0xff] }
  0x55   :  { %3492 = vmatprep.mubr.msk.f32.mxu0 %vm164_vm0, %v55_v46  ;;  %v113_v46 = vld [vmem:[%s4907_s0 + $0x2e0] sm:$0xff] }
  0x58   :  { %3493 = vmatmul.mubr.msk.f32.gmra.mrb[34].mxu0 %vm164_vm0, %v56_v47  ;;  %v114_v47 = vld [vmem:[%s4907_s0 + $0x2e8] sm:$0xff] }
  0x59   :  { %3495 = vmatprep.mubr.msk.f32.mxu0 %vm164_vm0, %v57_v48  ;;  %v115_v48 = vld [vmem:[%s4907_s0 + $0x2f0] sm:$0xff] }
  0x5c   :  { %3496 = vmatmul.mubr.msk.f32.gmra.mrb[36].mxu0 %vm164_vm0, %v58_v49  ;;  %v116_v49 = vld [vmem:[%s4907_s0 + $0x2f8] sm:$0xff] }
  0x5d   :  { %3498 = vmatprep.mubr.msk.f32.mxu0 %vm164_vm0, %v59_v50  ;;  %v117_v50 = vld [vmem:[%s4907_s0 + $0x300] sm:$0xff] }
  0x60   :  { %3499 = vmatmul.mubr.msk.f32.gmra.mrb[38].mxu0 %vm164_vm0, %v60_v51  ;;  %v118_v51 = vld [vmem:[%s4907_s0 + $0x308] sm:$0xff] }
  0x61   :  { %3501 = vmatprep.mubr.msk.f32.mxu0 %vm164_vm0, %v61_v52  ;;  %v119_v52 = vld [vmem:[%s4907_s0 + $0x310] sm:$0xff] }
  0x64   :  { %3502 = vmatmul.mubr.msk.f32.gmra.mrb[40].mxu0 %vm164_vm0, %v62_v53  ;;  %v120_v53 = vld [vmem:[%s4907_s0 + $0x318] sm:$0xff] }
  0x65   :  { %3504 = vmatprep.mubr.msk.f32.mxu0 %vm164_vm0, %v63_v54  ;;  %v121_v54 = vld [vmem:[%s4907_s0 + $0x320] sm:$0xff] }
  0x68   :  { %3505 = vmatmul.mubr.msk.f32.gmra.mrb[42].mxu0 %vm164_vm0, %v64_v58  ;;  %v125_v58 = vld [vmem:[%s4907_s0 + $0x340] sm:$0xff] }
  0x69   :  { %3507 = vmatprep.mubr.msk.f32.mxu0 %vm164_vm0, %v65_v59  ;;  %v126_v59 = vld [vmem:[%s4907_s0 + $0x348] sm:$0xff] }
  0x6c   :  { %3508 = vmatmul.mubr.msk.f32.gmra.mrb[44].mxu0 %vm164_vm0, %v66_v62  ;;  %v128_v62 = vld [vmem:[%s4907_s0 + $0x358] sm:$0xff] }
  0x6d   :  { %3510 = vmatprep.mubr.msk.f32.mxu0 %vm164_vm0, %v67_v0 }
  0x70   :  { %3511 = vmatmul.mubr.msk.f32.gmra.mrb[46].mxu0 %vm164_vm0, %v68_v1 }
  0x71   :  { %3513 = vmatprep.mubr.msk.f32.mxu0 %vm164_vm0, %v69_v2 }
  0x74   :  { %3514 = vmatmul.mubr.msk.f32.gmra.mrb[48].mxu0 %vm164_vm0, %v70_v3 }
  0x75   :  { %3516 = vmatprep.mubr.msk.f32.mxu0 %vm164_vm0, %v71_v4  ;;  %v130_v4 = vld [vmem:[%s4907_s0 + $0x368] sm:$0xff] }
  0x78   :  { %3517 = vmatmul.mubr.msk.f32.gmra.mrb[50].mxu0 %vm164_vm0, %v72_v5  ;;  %v131_v5 = vld [vmem:[%s4907_s0 + $0x370] sm:$0xff] }
  0x79   :  { %3519 = vmatprep.mubr.msk.f32.mxu0 %vm164_vm0, %v73_v6 }
  0x7c   :  { %3520 = vmatmul.mubr.msk.f32.gmra.mrb[52].mxu0 %vm164_vm0, %v74_v7 }
  0x7d   :  { %3522 = vmatprep.mubr.msk.f32.mxu0 %vm164_vm0, %v75_v8 }
  0x80   :  { %3523 = vmatmul.mubr.msk.f32.gmra.mrb[54].mxu0 %vm164_vm0, %v76_v9 }
  0x81   :  { %3525 = vmatprep.mubr.msk.f32.mxu0 %vm164_vm0, %v77_v10 }
  0x84   :  { %3526 = vmatmul.mubr.msk.f32.gmra.mrb[56].mxu0 %vm164_vm0, %v78_v11 }
  0x85   :  { %3528 = vmatprep.mubr.msk.f32.mxu0 %vm164_vm0, %v79_v12  ;;  %v132_v12 = vld [vmem:[%s4907_s0 + $0x378] sm:$0xff] }
  0x88   :  { %3529 = vmatmul.mubr.msk.f32.gmra.mrb[58].mxu0 %vm164_vm0, %v80_v13  ;;  %v133_v13 = vld [vmem:[%s4907_s0 + $0x380] sm:$0xff] }
  0x89   :  { %3531 = vmatprep.mubr.msk.f32.mxu0 %vm164_vm0, %v81_v14 }
  0x8c   :  { %3532 = vmatmul.mubr.msk.f32.gmra.mrb[60].mxu0 %vm164_vm0, %v82_v15 }
  0x8d   :  { %3534 = vmatprep.mubr.msk.f32.mxu0 %vm164_vm0, %v83_v16 }
  0x90   :  { %3535 = vmatmul.mubr.msk.f32.gmra.mrb[62].mxu0 %vm164_vm0, %v84_v17 }
  0x91   :  { %3537 = vmatprep.mubr.msk.f32.mxu0 %vm164_vm0, %v85_v18 }
  0x94   :  { %3538 = vmatmul.mubr.msk.f32.gmra.mrb[64].mxu0 %vm164_vm0, %v86_v19 }
  0x95   :  { %3540 = vmatprep.mubr.msk.f32.mxu0 %vm164_vm0, %v87_v20  ;;  %v134_v20 = vld [vmem:[%s4907_s0 + $0x388] sm:$0xff] }
  0x98   :  { %3541 = vmatmul.mubr.msk.f32.gmra.mrb[66].mxu0 %vm164_vm0, %v88_v21  ;;  %v135_v21 = vld [vmem:[%s4907_s0 + $0x390] sm:$0xff] }
  0x99   :  { %3543 = vmatprep.mubr.msk.f32.mxu0 %vm164_vm0, %v89_v22 }
  0x9c   :  { %3544 = vmatmul.mubr.msk.f32.gmra.mrb[68].mxu0 %vm164_vm0, %v90_v23 }
  0x9d   :  { %3546 = vmatprep.mubr.msk.f32.mxu0 %vm164_vm0, %v91_v24 }
  0xa0   :  { %3547 = vmatmul.mubr.msk.f32.gmra.mrb[70].mxu0 %vm164_vm0, %v92_v25 }
  0xa1   :  { %3549 = vmatprep.mubr.msk.f32.mxu0 %vm164_vm0, %v93_v26 }
  0xa4   :  { %3550 = vmatmul.mubr.msk.f32.gmra.mrb[72].mxu0 %vm164_vm0, %v94_v27 }
  0xa5   :  { %3552 = vmatprep.mubr.msk.f32.mxu0 %vm164_vm0, %v95_v28  ;;  %v136_v28 = vld [vmem:[%s4907_s0 + $0x398] sm:$0xff] }
  0xa8   :  { %3553 = vmatmul.mubr.msk.f32.gmra.mrb[74].mxu0 %vm164_vm0, %v96_v29  ;;  %v137_v29 = vld [vmem:[%s4907_s0 + $0x3a0] sm:$0xff] }
  0xa9   :  { %3555 = vmatprep.mubr.msk.f32.mxu0 %vm164_vm0, %v97_v30 }
  0xac   :  { %3556 = vmatmul.mubr.msk.f32.gmra.mrb[76].mxu0 %vm164_vm0, %v98_v31 }
  0xad   :  { %3558 = vmatprep.mubr.msk.f32.mxu0 %vm164_vm0, %v99_v32 }
  0xb0   :  { %3559 = vmatmul.mubr.msk.f32.gmra.mrb[78].mxu0 %vm164_vm0, %v100_v33 }
  0xb1   :  { %3561 = vmatprep.mubr.msk.f32.mxu0 %vm164_vm0, %v101_v34 }
  0xb4   :  { %3562 = vmatmul.mubr.msk.f32.gmra.mrb[80].mxu0 %vm164_vm0, %v102_v35 }
  0xb5   :  { %3564 = vmatprep.mubr.msk.f32.mxu0 %vm164_vm0, %v103_v36  ;;  %v138_v36 = vld [vmem:[%s4907_s0 + $0x3a8] sm:$0xff] }
  0xb8   :  { %3565 = vmatmul.mubr.msk.f32.gmra.mrb[82].mxu0 %vm164_vm0, %v104_v37  ;;  %v139_v37 = vld [vmem:[%s4907_s0 + $0x3b0] sm:$0xff] }
  0xb9   :  { %3567 = vmatprep.mubr.msk.f32.mxu0 %vm164_vm0, %v105_v38 }
  0xbc   :  { %3568 = vmatmul.mubr.msk.f32.gmra.mrb[84].mxu0 %vm164_vm0, %v106_v39 }
  0xbd   :  { %3570 = vmatprep.mubr.msk.f32.mxu0 %vm164_vm0, %v107_v40 }
  0xc0   :  { %3571 = vmatmul.mubr.msk.f32.gmra.mrb[86].mxu0 %vm164_vm0, %v108_v41 }
  0xc1   :  { %3573 = vmatprep.mubr.msk.f32.mxu0 %vm164_vm0, %v109_v42 }
  0xc4   :  { %3574 = vmatmul.mubr.msk.f32.gmra.mrb[88].mxu0 %vm164_vm0, %v110_v43 }
  0xc5   :  { %3576 = vmatprep.mubr.msk.f32.mxu0 %vm164_vm0, %v111_v44  ;;  %v140_v44 = vld [vmem:[%s4907_s0 + $0x3b8] sm:$0xff] }
  0xc8   :  { %3577 = vmatmul.mubr.msk.f32.gmra.mrb[90].mxu0 %vm164_vm0, %v112_v45  ;;  %v141_v45 = vld [vmem:[%s4907_s0 + $0x3c0] sm:$0xff] }
  0xc9   :  { %3579 = vmatprep.mubr.msk.f32.mxu0 %vm164_vm0, %v113_v46 }
  0xcc   :  { %3580 = vmatmul.mubr.msk.f32.gmra.mrb[92].mxu0 %vm164_vm0, %v114_v47 }
  0xcd   :  { %3582 = vmatprep.mubr.msk.f32.mxu0 %vm164_vm0, %v115_v48 }
  0xd0   :  { %3583 = vmatmul.mubr.msk.f32.gmra.mrb[94].mxu0 %vm164_vm0, %v116_v49 }
  0xd1   :  { %3585 = vmatprep.mubr.msk.f32.mxu0 %vm164_vm0, %v117_v50 }
  0xd4   :  { %3586 = vmatmul.mubr.msk.f32.gmra.mrb[96].mxu0 %vm164_vm0, %v118_v51 }
  0xd5   :  { %3588 = vmatprep.mubr.msk.f32.mxu0 %vm164_vm0, %v119_v52  ;;  %v142_v52 = vld [vmem:[%s4907_s0 + $0x3c8] sm:$0xff] }
  0xd8   :  { %3589 = vmatmul.mubr.msk.f32.gmra.mrb[98].mxu0 %vm164_vm0, %v120_v53  ;;  %v143_v53 = vld [vmem:[%s4907_s0 + $0x3d0] sm:$0xff] }
  0xd9   :  { %3591 = vmatprep.mubr.msk.f32.mxu0 %vm164_vm0, %v121_v54 }
  0xdc   :  { %3592 = vmatmul.mubr.msk.f32.gmra.mrb[100].mxu0 %vm164_vm0, %v122_v55 }
  0xdd   :  { %3594 = vmatprep.mubr.msk.f32.mxu0 %vm164_vm0, %v123_v56 }
  0xe0   :  { %3595 = vmatmul.mubr.msk.f32.gmra.mrb[102].mxu0 %vm164_vm0, %v124_v57 }
  0xe1   :  { %3597 = vmatprep.mubr.msk.f32.mxu0 %vm164_vm0, %v125_v58 }
  0xe4   :  { %3598 = vmatmul.mubr.msk.f32.gmra.mrb[104].mxu0 %vm164_vm0, %v126_v59 }
  0xe5   :  { %3600 = vmatprep.mubr.msk.f32.mxu0 %vm164_vm0, %v127_v60  ;;  %v144_v60 = vld [vmem:[%s4907_s0 + $0x3d8] sm:$0xff] }
  0xe7   :  { %v3443_v0 = vpop.f32.mrb[0].mxu0 }
  0xe8   :  { %v621_v1 = vadd.f32 %v3443_v0, %v4385_v61  ;;  %v615_v2 = vpop.f32.mrb[1].mxu0  ;;  %3601 = vmatmul.mubr.msk.f32.gmra.mrb[106].mxu0 %vm164_vm0, %v128_v62  ;;  %v145_v62 = vld [vmem:[%s4907_s0 + $0x3e0] sm:$0xff] }
  0xe9   :  { %v616_v3 = vadd.f32 %v4385_v61, %v615_v2  ;;  %3603 = vmatprep.mubr.msk.f32.mxu0 %vm164_vm0, %v129_v63 }
  0xea   :  { %v1255_v8 = vmax.f32 %v621_v1, 0.0 }
  0xeb   :  { %v1254_v6 = vmax.f32 %v616_v3, 0.0  ;;  %v3446_v7 = vpop.f32.mrb[2].mxu0 }
  0xec   :  { %v631_v9 = vadd.f32 %v3446_v7, %v4385_v61  ;;  %v625_v10 = vpop.f32.mrb[3].mxu0  ;;  %3604 = vmatmul.mubr.msk.f32.gmra.mrb[108].mxu0 %vm164_vm0, %v130_v4 }
  0xed   :  { %v626_v11 = vadd.f32 %v4385_v61, %v625_v10  ;;  %3641 = vmatprep.mubr.msk.f32.mxu1 %vm1393_vm1, %v1254_v6  ;;  %3606 = vmatprep.mubr.msk.f32.mxu0 %vm164_vm0, %v131_v5  ;;  %v146_v5 = vld [vmem:[%s4907_s0 + $0x3e8] sm:$0xff]  ;;  %v147_v6 = vld [vmem:[%s4907_s0 + $0x3f0] sm:$0xff] }
  0xee   :  { %3642 = vmatmul.mubr.msk.f32.vlgmr.msra.gmra.mrb[0].mxu1 %vm1393_vm1, %v1255_v8  ;;  %v1257_v16 = vmax.f32 %v631_v9, 0.0 }
  0xef   :  { %v1256_v14 = vmax.f32 %v626_v11, 0.0  ;;  %v3449_v15 = vpop.f32.mrb[4].mxu0 }
  0xf0   :  { %v641_v17 = vadd.f32 %v3449_v15, %v4385_v61  ;;  %v635_v18 = vpop.f32.mrb[5].mxu0  ;;  %3607 = vmatmul.mubr.msk.f32.gmra.mrb[110].mxu0 %vm164_vm0, %v132_v12 }
  0xf1   :  { %v636_v19 = vadd.f32 %v4385_v61, %v635_v18  ;;  %3644 = vmatprep.mubr.msk.f32.mxu1 %vm1393_vm1, %v1256_v14  ;;  %3609 = vmatprep.mubr.msk.f32.mxu0 %vm164_vm0, %v133_v13  ;;  %v148_v13 = vld [vmem:[%s4907_s0 + $0x3f8] sm:$0xff] }
  0xf2   :  { %3645 = vmatmul.mubr.msk.f32.gmra.mrb[2].mxu1 %vm1393_vm1, %v1257_v16  ;;  %v1259_v24 = vmax.f32 %v641_v17, 0.0 }
  0xf3   :  { %v1258_v22 = vmax.f32 %v636_v19, 0.0  ;;  %v3452_v23 = vpop.f32.mrb[6].mxu0 }
  0xf4   :  { %v651_v25 = vadd.f32 %v3452_v23, %v4385_v61  ;;  %v645_v26 = vpop.f32.mrb[7].mxu0  ;;  %3610 = vmatmul.mubr.msk.f32.gmra.mrb[112].mxu0 %vm164_vm0, %v134_v20 }
  0xf5   :  { %v646_v27 = vadd.f32 %v4385_v61, %v645_v26  ;;  %3647 = vmatprep.mubr.msk.f32.mxu1 %vm1393_vm1, %v1258_v22  ;;  %3612 = vmatprep.mubr.msk.f32.mxu0 %vm164_vm0, %v135_v21 }
  0xf6   :  { %3648 = vmatmul.mubr.msk.f32.gmra.mrb[4].mxu1 %vm1393_vm1, %v1259_v24  ;;  %v1261_v32 = vmax.f32 %v651_v25, 0.0 }
  0xf7   :  { %v1260_v30 = vmax.f32 %v646_v27, 0.0  ;;  %v3455_v31 = vpop.f32.mrb[8].mxu0 }
  0xf8   :  { %v661_v33 = vadd.f32 %v3455_v31, %v4385_v61  ;;  %v655_v34 = vpop.f32.mrb[9].mxu0  ;;  %3613 = vmatmul.mubr.msk.f32.gmra.mrb[114].mxu0 %vm164_vm0, %v136_v28 }
  0xf9   :  { %v656_v35 = vadd.f32 %v4385_v61, %v655_v34  ;;  %3650 = vmatprep.mubr.msk.f32.mxu1 %vm1393_vm1, %v1260_v30  ;;  %3615 = vmatprep.mubr.msk.f32.mxu0 %vm164_vm0, %v137_v29 }
  0xfa   :  { %3651 = vmatmul.mubr.msk.f32.gmra.mrb[6].mxu1 %vm1393_vm1, %v1261_v32  ;;  %v1263_v40 = vmax.f32 %v661_v33, 0.0 }
  0xfb   :  { %v1262_v38 = vmax.f32 %v656_v35, 0.0  ;;  %v3458_v39 = vpop.f32.mrb[10].mxu0 }
  0xfc   :  { %v671_v41 = vadd.f32 %v3458_v39, %v4385_v61  ;;  %v665_v42 = vpop.f32.mrb[11].mxu0  ;;  %3616 = vmatmul.mubr.msk.f32.gmra.mrb[116].mxu0 %vm164_vm0, %v138_v36 }
  0xfd   :  { %v666_v43 = vadd.f32 %v4385_v61, %v665_v42  ;;  %3653 = vmatprep.mubr.msk.f32.mxu1 %vm1393_vm1, %v1262_v38  ;;  %3618 = vmatprep.mubr.msk.f32.mxu0 %vm164_vm0, %v139_v37 }
  0xfe   :  { %3654 = vmatmul.mubr.msk.f32.gmra.mrb[8].mxu1 %vm1393_vm1, %v1263_v40  ;;  %v1265_v48 = vmax.f32 %v671_v41, 0.0 }
  0xff   :  { %v1264_v46 = vmax.f32 %v666_v43, 0.0  ;;  %v3461_v47 = vpop.f32.mrb[12].mxu0 }
 0x100   :  { %v681_v49 = vadd.f32 %v3461_v47, %v4385_v61  ;;  %v675_v50 = vpop.f32.mrb[13].mxu0  ;;  %3619 = vmatmul.mubr.msk.f32.gmra.mrb[118].mxu0 %vm164_vm0, %v140_v44 }
 0x101   :  { %v676_v51 = vadd.f32 %v4385_v61, %v675_v50  ;;  %3656 = vmatprep.mubr.msk.f32.mxu1 %vm1393_vm1, %v1264_v46  ;;  %3621 = vmatprep.mubr.msk.f32.mxu0 %vm164_vm0, %v141_v45 }
 0x102   :  { %3657 = vmatmul.mubr.msk.f32.gmra.mrb[10].mxu1 %vm1393_vm1, %v1265_v48  ;;  %v1267_v56 = vmax.f32 %v681_v49, 0.0 }
 0x103   :  { %v1266_v54 = vmax.f32 %v676_v51, 0.0  ;;  %v3464_v55 = vpop.f32.mrb[14].mxu0 }
 0x104   :  { %v691_v57 = vadd.f32 %v3464_v55, %v4385_v61  ;;  %v685_v58 = vpop.f32.mrb[15].mxu0  ;;  %3622 = vmatmul.mubr.msk.f32.gmra.mrb[120].mxu0 %vm164_vm0, %v142_v52 }
 0x105   :  { %v686_v59 = vadd.f32 %v4385_v61, %v685_v58  ;;  %3659 = vmatprep.mubr.msk.f32.mxu1 %vm1393_vm1, %v1266_v54  ;;  %3624 = vmatprep.mubr.msk.f32.mxu0 %vm164_vm0, %v143_v53 }
 0x106   :  { %3660 = vmatmul.mubr.msk.f32.gmra.mrb[12].mxu1 %vm1393_vm1, %v1267_v56  ;;  %v1269_v1 = vmax.f32 %v691_v57, 0.0 }
 0x107   :  { %v1268_v63 = vmax.f32 %v686_v59, 0.0  ;;  %v3467_v0 = vpop.f32.mrb[16].mxu0 }
 0x108   :  { %v701_v2 = vadd.f32 %v3467_v0, %v4385_v61  ;;  %v695_v3 = vpop.f32.mrb[17].mxu0  ;;  %3625 = vmatmul.mubr.msk.f32.gmra.mrb[122].mxu0 %vm164_vm0, %v144_v60 }
 0x109   :  { %v696_v4 = vadd.f32 %v4385_v61, %v695_v3  ;;  %3662 = vmatprep.mubr.msk.f32.mxu1 %vm1393_vm1, %v1268_v63  ;;  %3627 = vmatprep.mubr.msk.f32.mxu0 %vm164_vm0, %v145_v62 }
 0x10a   :  { %3663 = vmatmul.mubr.msk.f32.gmra.mrb[14].mxu1 %vm1393_vm1, %v1269_v1  ;;  %v1271_v9 = vmax.f32 %v701_v2, 0.0 }
 0x10b   :  { %v1270_v7 = vmax.f32 %v696_v4, 0.0  ;;  %v3470_v8 = vpop.f32.mrb[18].mxu0 }
 0x10c   :  { %v711_v10 = vadd.f32 %v3470_v8, %v4385_v61  ;;  %v705_v11 = vpop.f32.mrb[19].mxu0  ;;  %3628 = vmatmul.mubr.msk.f32.gmra.mrb[124].mxu0 %vm164_vm0, %v146_v5 }
 0x10d   :  { %v706_v12 = vadd.f32 %v4385_v61, %v705_v11  ;;  %3665 = vmatprep.mubr.msk.f32.mxu1 %vm1393_vm1, %v1270_v7  ;;  %3630 = vmatprep.mubr.msk.f32.mxu0 %vm164_vm0, %v147_v6 }
 0x10e   :  { %3666 = vmatmul.mubr.msk.f32.gmra.mrb[16].mxu1 %vm1393_vm1, %v1271_v9  ;;  %v1273_v16 = vmax.f32 %v711_v10, 0.0 }
 0x10f   :  { %v1272_v14 = vmax.f32 %v706_v12, 0.0  ;;  %v3473_v15 = vpop.f32.mrb[20].mxu0 }
 0x110   :  { %v721_v17 = vadd.f32 %v3473_v15, %v4385_v61  ;;  %v715_v18 = vpop.f32.mrb[21].mxu0  ;;  %3631 = vmatmul.mubr.msk.f32.gmra.mrb[126].mxu0 %vm164_vm0, %v148_v13 }
 0x111   :  { %v716_v19 = vadd.f32 %v4385_v61, %v715_v18  ;;  %3668 = vmatprep.mubr.msk.f32.mxu1 %vm1393_vm1, %v1272_v14 }
 0x112   :  { %3669 = vmatmul.mubr.msk.f32.gmra.mrb[18].mxu1 %vm1393_vm1, %v1273_v16  ;;  %v1275_v22 = vmax.f32 %v721_v17, 0.0 }
 0x113   :  { %v1274_v20 = vmax.f32 %v716_v19, 0.0  ;;  %v3476_v21 = vpop.f32.mrb[22].mxu0 }
 0x114   :  { %v731_v23 = vadd.f32 %v3476_v21, %v4385_v61  ;;  %v725_v24 = vpop.f32.mrb[23].mxu0 }
 0x115   :  { %v726_v25 = vadd.f32 %v4385_v61, %v725_v24  ;;  %3671 = vmatprep.mubr.msk.f32.mxu1 %vm1393_vm1, %v1274_v20 }
 0x116   :  { %3672 = vmatmul.mubr.msk.f32.gmra.mrb[20].mxu1 %vm1393_vm1, %v1275_v22  ;;  %v1277_v28 = vmax.f32 %v731_v23, 0.0 }
 0x117   :  { %v1276_v26 = vmax.f32 %v726_v25, 0.0  ;;  %v3479_v27 = vpop.f32.mrb[24].mxu0 }
 0x118   :  { %v741_v29 = vadd.f32 %v3479_v27, %v4385_v61  ;;  %v735_v30 = vpop.f32.mrb[25].mxu0 }
 0x119   :  { %v736_v31 = vadd.f32 %v4385_v61, %v735_v30  ;;  %3674 = vmatprep.mubr.msk.f32.mxu1 %vm1393_vm1, %v1276_v26 }
 0x11a   :  { %3675 = vmatmul.mubr.msk.f32.gmra.mrb[22].mxu1 %vm1393_vm1, %v1277_v28  ;;  %v1279_v34 = vmax.f32 %v741_v29, 0.0 }
 0x11b   :  { %v1278_v32 = vmax.f32 %v736_v31, 0.0  ;;  %v3482_v33 = vpop.f32.mrb[26].mxu0 }
 0x11c   :  { %v751_v35 = vadd.f32 %v3482_v33, %v4385_v61  ;;  %v745_v36 = vpop.f32.mrb[27].mxu0 }
 0x11d   :  { %v746_v37 = vadd.f32 %v4385_v61, %v745_v36  ;;  %3677 = vmatprep.mubr.msk.f32.mxu1 %vm1393_vm1, %v1278_v32 }
 0x11e   :  { %3678 = vmatmul.mubr.msk.f32.gmra.mrb[24].mxu1 %vm1393_vm1, %v1279_v34  ;;  %v1281_v40 = vmax.f32 %v751_v35, 0.0 }
 0x11f   :  { %v1280_v38 = vmax.f32 %v746_v37, 0.0  ;;  %v3485_v39 = vpop.f32.mrb[28].mxu0 }
 0x120   :  { %v761_v41 = vadd.f32 %v3485_v39, %v4385_v61  ;;  %v755_v42 = vpop.f32.mrb[29].mxu0 }
 0x121   :  { %v756_v43 = vadd.f32 %v4385_v61, %v755_v42  ;;  %3680 = vmatprep.mubr.msk.f32.mxu1 %vm1393_vm1, %v1280_v38 }
 0x122   :  { %3681 = vmatmul.mubr.msk.f32.gmra.mrb[26].mxu1 %vm1393_vm1, %v1281_v40  ;;  %v1283_v46 = vmax.f32 %v761_v41, 0.0 }
 0x123   :  { %v1282_v44 = vmax.f32 %v756_v43, 0.0  ;;  %v3488_v45 = vpop.f32.mrb[30].mxu0 }
 0x124   :  { %v771_v47 = vadd.f32 %v3488_v45, %v4385_v61  ;;  %v765_v48 = vpop.f32.mrb[31].mxu0 }
 0x125   :  { %v766_v49 = vadd.f32 %v4385_v61, %v765_v48  ;;  %3683 = vmatprep.mubr.msk.f32.mxu1 %vm1393_vm1, %v1282_v44 }
 0x126   :  { %3684 = vmatmul.mubr.msk.f32.gmra.mrb[28].mxu1 %vm1393_vm1, %v1283_v46  ;;  %v1285_v52 = vmax.f32 %v771_v47, 0.0 }
 0x127   :  { %v1284_v50 = vmax.f32 %v766_v49, 0.0  ;;  %v3491_v51 = vpop.f32.mrb[32].mxu0 }
 0x128   :  { %v781_v53 = vadd.f32 %v3491_v51, %v4385_v61  ;;  %v775_v54 = vpop.f32.mrb[33].mxu0 }
 0x129   :  { %v776_v55 = vadd.f32 %v4385_v61, %v775_v54  ;;  %3686 = vmatprep.mubr.msk.f32.mxu1 %vm1393_vm1, %v1284_v50 }
 0x12a   :  { %3687 = vmatmul.mubr.msk.f32.gmra.mrb[30].mxu1 %vm1393_vm1, %v1285_v52  ;;  %v1287_v58 = vmax.f32 %v781_v53, 0.0 }
 0x12b   :  { %v1286_v56 = vmax.f32 %v776_v55, 0.0  ;;  %v3494_v57 = vpop.f32.mrb[34].mxu0 }
 0x12c   :  { %v791_v59 = vadd.f32 %v3494_v57, %v4385_v61  ;;  %v785_v60 = vpop.f32.mrb[35].mxu0 }
 0x12d   :  { %v786_v62 = vadd.f32 %v4385_v61, %v785_v60  ;;  %3689 = vmatprep.mubr.msk.f32.mxu1 %vm1393_vm1, %v1286_v56 }
 0x12e   :  { %3690 = vmatmul.mubr.msk.f32.gmra.mrb[32].mxu1 %vm1393_vm1, %v1287_v58  ;;  %v1289_v1 = vmax.f32 %v791_v59, 0.0 }
 0x12f   :  { %v1288_v63 = vmax.f32 %v786_v62, 0.0  ;;  %v3497_v0 = vpop.f32.mrb[36].mxu0 }
 0x130   :  { %v801_v2 = vadd.f32 %v3497_v0, %v4385_v61  ;;  %v795_v3 = vpop.f32.mrb[37].mxu0 }
 0x131   :  { %v796_v4 = vadd.f32 %v4385_v61, %v795_v3  ;;  %3692 = vmatprep.mubr.msk.f32.mxu1 %vm1393_vm1, %v1288_v63 }
 0x132   :  { %3693 = vmatmul.mubr.msk.f32.gmra.mrb[34].mxu1 %vm1393_vm1, %v1289_v1  ;;  %v1291_v7 = vmax.f32 %v801_v2, 0.0 }
 0x133   :  { %v1290_v5 = vmax.f32 %v796_v4, 0.0  ;;  %v3500_v6 = vpop.f32.mrb[38].mxu0 }
 0x134   :  { %v811_v8 = vadd.f32 %v3500_v6, %v4385_v61  ;;  %v805_v9 = vpop.f32.mrb[39].mxu0 }
 0x135   :  { %v806_v10 = vadd.f32 %v4385_v61, %v805_v9  ;;  %3695 = vmatprep.mubr.msk.f32.mxu1 %vm1393_vm1, %v1290_v5 }
 0x136   :  { %3696 = vmatmul.mubr.msk.f32.gmra.mrb[36].mxu1 %vm1393_vm1, %v1291_v7  ;;  %v1293_v13 = vmax.f32 %v811_v8, 0.0 }
 0x137   :  { %v1292_v11 = vmax.f32 %v806_v10, 0.0  ;;  %v3503_v12 = vpop.f32.mrb[40].mxu0 }
 0x138   :  { %v821_v14 = vadd.f32 %v3503_v12, %v4385_v61  ;;  %v815_v15 = vpop.f32.mrb[41].mxu0 }
 0x139   :  { %v816_v16 = vadd.f32 %v4385_v61, %v815_v15  ;;  %3698 = vmatprep.mubr.msk.f32.mxu1 %vm1393_vm1, %v1292_v11 }
 0x13a   :  { %3699 = vmatmul.mubr.msk.f32.gmra.mrb[38].mxu1 %vm1393_vm1, %v1293_v13  ;;  %v1295_v19 = vmax.f32 %v821_v14, 0.0 }
 0x13b   :  { %v1294_v17 = vmax.f32 %v816_v16, 0.0  ;;  %v3506_v18 = vpop.f32.mrb[42].mxu0 }
 0x13c   :  { %v831_v20 = vadd.f32 %v3506_v18, %v4385_v61  ;;  %v825_v21 = vpop.f32.mrb[43].mxu0 }
 0x13d   :  { %v826_v22 = vadd.f32 %v4385_v61, %v825_v21  ;;  %3701 = vmatprep.mubr.msk.f32.mxu1 %vm1393_vm1, %v1294_v17 }
 0x13e   :  { %3702 = vmatmul.mubr.msk.f32.gmra.mrb[40].mxu1 %vm1393_vm1, %v1295_v19  ;;  %v1297_v25 = vmax.f32 %v831_v20, 0.0 }
 0x13f   :  { %v1296_v23 = vmax.f32 %v826_v22, 0.0  ;;  %v3509_v24 = vpop.f32.mrb[44].mxu0 }
 0x140   :  { %v841_v26 = vadd.f32 %v3509_v24, %v4385_v61  ;;  %v835_v27 = vpop.f32.mrb[45].mxu0 }
 0x141   :  { %v836_v28 = vadd.f32 %v4385_v61, %v835_v27  ;;  %3704 = vmatprep.mubr.msk.f32.mxu1 %vm1393_vm1, %v1296_v23 }
 0x142   :  { %3705 = vmatmul.mubr.msk.f32.gmra.mrb[42].mxu1 %vm1393_vm1, %v1297_v25  ;;  %v1299_v31 = vmax.f32 %v841_v26, 0.0 }
 0x143   :  { %v1298_v29 = vmax.f32 %v836_v28, 0.0  ;;  %v3512_v30 = vpop.f32.mrb[46].mxu0 }
 0x144   :  { %v851_v32 = vadd.f32 %v3512_v30, %v4385_v61  ;;  %v845_v33 = vpop.f32.mrb[47].mxu0 }
 0x145   :  { %v846_v34 = vadd.f32 %v4385_v61, %v845_v33  ;;  %3707 = vmatprep.mubr.msk.f32.mxu1 %vm1393_vm1, %v1298_v29 }
 0x146   :  { %3708 = vmatmul.mubr.msk.f32.gmra.mrb[44].mxu1 %vm1393_vm1, %v1299_v31  ;;  %v1301_v37 = vmax.f32 %v851_v32, 0.0 }
 0x147   :  { %v1300_v35 = vmax.f32 %v846_v34, 0.0  ;;  %v3515_v36 = vpop.f32.mrb[48].mxu0 }
 0x148   :  { %v861_v38 = vadd.f32 %v3515_v36, %v4385_v61  ;;  %v855_v39 = vpop.f32.mrb[49].mxu0 }
 0x149   :  { %v856_v40 = vadd.f32 %v4385_v61, %v855_v39  ;;  %3710 = vmatprep.mubr.msk.f32.mxu1 %vm1393_vm1, %v1300_v35 }
 0x14a   :  { %3711 = vmatmul.mubr.msk.f32.gmra.mrb[46].mxu1 %vm1393_vm1, %v1301_v37  ;;  %v1303_v43 = vmax.f32 %v861_v38, 0.0 }
 0x14b   :  { %v1302_v41 = vmax.f32 %v856_v40, 0.0  ;;  %v3518_v42 = vpop.f32.mrb[50].mxu0 }
 0x14c   :  { %v871_v44 = vadd.f32 %v3518_v42, %v4385_v61  ;;  %v865_v45 = vpop.f32.mrb[51].mxu0 }
 0x14d   :  { %v866_v46 = vadd.f32 %v4385_v61, %v865_v45  ;;  %3713 = vmatprep.mubr.msk.f32.mxu1 %vm1393_vm1, %v1302_v41 }
 0x14e   :  { %3714 = vmatmul.mubr.msk.f32.gmra.mrb[48].mxu1 %vm1393_vm1, %v1303_v43  ;;  %v1305_v49 = vmax.f32 %v871_v44, 0.0 }
 0x14f   :  { %v1304_v47 = vmax.f32 %v866_v46, 0.0  ;;  %v3521_v48 = vpop.f32.mrb[52].mxu0 }
 0x150   :  { %v881_v50 = vadd.f32 %v3521_v48, %v4385_v61  ;;  %v875_v51 = vpop.f32.mrb[53].mxu0 }
 0x151   :  { %v876_v52 = vadd.f32 %v4385_v61, %v875_v51  ;;  %3716 = vmatprep.mubr.msk.f32.mxu1 %vm1393_vm1, %v1304_v47 }
 0x152   :  { %3717 = vmatmul.mubr.msk.f32.gmra.mrb[50].mxu1 %vm1393_vm1, %v1305_v49  ;;  %v1307_v55 = vmax.f32 %v881_v50, 0.0 }
 0x153   :  { %v1306_v53 = vmax.f32 %v876_v52, 0.0  ;;  %v3524_v54 = vpop.f32.mrb[54].mxu0 }
 0x154   :  { %v891_v56 = vadd.f32 %v3524_v54, %v4385_v61  ;;  %v885_v57 = vpop.f32.mrb[55].mxu0 }
 0x155   :  { %v886_v58 = vadd.f32 %v4385_v61, %v885_v57  ;;  %3719 = vmatprep.mubr.msk.f32.mxu1 %vm1393_vm1, %v1306_v53 }
 0x156   :  { %3720 = vmatmul.mubr.msk.f32.gmra.mrb[52].mxu1 %vm1393_vm1, %v1307_v55  ;;  %v1309_v62 = vmax.f32 %v891_v56, 0.0 }
 0x157   :  { %v1308_v59 = vmax.f32 %v886_v58, 0.0  ;;  %v3527_v60 = vpop.f32.mrb[56].mxu0 }
 0x158   :  { %v901_v63 = vadd.f32 %v3527_v60, %v4385_v61  ;;  %v895_v0 = vpop.f32.mrb[57].mxu0 }
 0x159   :  { %v896_v1 = vadd.f32 %v4385_v61, %v895_v0  ;;  %3722 = vmatprep.mubr.msk.f32.mxu1 %vm1393_vm1, %v1308_v59 }
 0x15a   :  { %3723 = vmatmul.mubr.msk.f32.gmra.mrb[54].mxu1 %vm1393_vm1, %v1309_v62  ;;  %v1311_v4 = vmax.f32 %v901_v63, 0.0 }
 0x15b   :  { %v1310_v2 = vmax.f32 %v896_v1, 0.0  ;;  %v3530_v3 = vpop.f32.mrb[58].mxu0 }
 0x15c   :  { %v911_v5 = vadd.f32 %v3530_v3, %v4385_v61  ;;  %v905_v6 = vpop.f32.mrb[59].mxu0 }
 0x15d   :  { %v906_v7 = vadd.f32 %v4385_v61, %v905_v6  ;;  %3725 = vmatprep.mubr.msk.f32.mxu1 %vm1393_vm1, %v1310_v2 }
 0x15e   :  { %3726 = vmatmul.mubr.msk.f32.gmra.mrb[56].mxu1 %vm1393_vm1, %v1311_v4  ;;  %v1313_v10 = vmax.f32 %v911_v5, 0.0 }
 0x15f   :  { %v1312_v8 = vmax.f32 %v906_v7, 0.0  ;;  %v3533_v9 = vpop.f32.mrb[60].mxu0 }
 0x160   :  { %v921_v11 = vadd.f32 %v3533_v9, %v4385_v61  ;;  %v915_v12 = vpop.f32.mrb[61].mxu0 }
 0x161   :  { %v916_v13 = vadd.f32 %v4385_v61, %v915_v12  ;;  %3728 = vmatprep.mubr.msk.f32.mxu1 %vm1393_vm1, %v1312_v8 }
 0x162   :  { %3729 = vmatmul.mubr.msk.f32.gmra.mrb[58].mxu1 %vm1393_vm1, %v1313_v10  ;;  %v1315_v16 = vmax.f32 %v921_v11, 0.0 }
 0x163   :  { %v1314_v14 = vmax.f32 %v916_v13, 0.0  ;;  %v3536_v15 = vpop.f32.mrb[62].mxu0 }
 0x164   :  { %v931_v17 = vadd.f32 %v3536_v15, %v4385_v61  ;;  %v925_v18 = vpop.f32.mrb[63].mxu0 }
 0x165   :  { %v926_v19 = vadd.f32 %v4385_v61, %v925_v18  ;;  %3731 = vmatprep.mubr.msk.f32.mxu1 %vm1393_vm1, %v1314_v14 }
 0x166   :  { %3732 = vmatmul.mubr.msk.f32.gmra.mrb[60].mxu1 %vm1393_vm1, %v1315_v16  ;;  %v1317_v22 = vmax.f32 %v931_v17, 0.0 }
 0x167   :  { %v1316_v20 = vmax.f32 %v926_v19, 0.0  ;;  %v3539_v21 = vpop.f32.mrb[64].mxu0 }
 0x168   :  { %v941_v23 = vadd.f32 %v3539_v21, %v4385_v61  ;;  %v935_v24 = vpop.f32.mrb[65].mxu0 }
 0x169   :  { %v936_v25 = vadd.f32 %v4385_v61, %v935_v24  ;;  %3734 = vmatprep.mubr.msk.f32.mxu1 %vm1393_vm1, %v1316_v20 }
 0x16a   :  { %3735 = vmatmul.mubr.msk.f32.gmra.mrb[62].mxu1 %vm1393_vm1, %v1317_v22  ;;  %v1319_v28 = vmax.f32 %v941_v23, 0.0 }
 0x16b   :  { %v1318_v26 = vmax.f32 %v936_v25, 0.0  ;;  %v3542_v27 = vpop.f32.mrb[66].mxu0 }
 0x16c   :  { %v951_v29 = vadd.f32 %v3542_v27, %v4385_v61  ;;  %v945_v30 = vpop.f32.mrb[67].mxu0 }
 0x16d   :  { %v946_v31 = vadd.f32 %v4385_v61, %v945_v30  ;;  %3737 = vmatprep.mubr.msk.f32.mxu1 %vm1393_vm1, %v1318_v26 }
 0x16e   :  { %3738 = vmatmul.mubr.msk.f32.gmra.mrb[64].mxu1 %vm1393_vm1, %v1319_v28  ;;  %v1321_v34 = vmax.f32 %v951_v29, 0.0 }
 0x16f   :  { %v1320_v32 = vmax.f32 %v946_v31, 0.0  ;;  %v3545_v33 = vpop.f32.mrb[68].mxu0 }
 0x170   :  { %v961_v35 = vadd.f32 %v3545_v33, %v4385_v61  ;;  %v955_v36 = vpop.f32.mrb[69].mxu0 }
 0x171   :  { %v956_v37 = vadd.f32 %v4385_v61, %v955_v36  ;;  %3740 = vmatprep.mubr.msk.f32.mxu1 %vm1393_vm1, %v1320_v32 }
 0x172   :  { %3741 = vmatmul.mubr.msk.f32.gmra.mrb[66].mxu1 %vm1393_vm1, %v1321_v34  ;;  %v1323_v40 = vmax.f32 %v961_v35, 0.0 }
 0x173   :  { %v1322_v38 = vmax.f32 %v956_v37, 0.0  ;;  %v3548_v39 = vpop.f32.mrb[70].mxu0 }
 0x174   :  { %v971_v41 = vadd.f32 %v3548_v39, %v4385_v61  ;;  %v965_v42 = vpop.f32.mrb[71].mxu0 }
 0x175   :  { %v966_v43 = vadd.f32 %v4385_v61, %v965_v42  ;;  %3743 = vmatprep.mubr.msk.f32.mxu1 %vm1393_vm1, %v1322_v38 }
 0x176   :  { %3744 = vmatmul.mubr.msk.f32.gmra.mrb[68].mxu1 %vm1393_vm1, %v1323_v40  ;;  %v1325_v46 = vmax.f32 %v971_v41, 0.0 }
 0x177   :  { %v1324_v44 = vmax.f32 %v966_v43, 0.0  ;;  %v3551_v45 = vpop.f32.mrb[72].mxu0 }
 0x178   :  { %v981_v47 = vadd.f32 %v3551_v45, %v4385_v61  ;;  %v975_v48 = vpop.f32.mrb[73].mxu0 }
 0x179   :  { %v976_v49 = vadd.f32 %v4385_v61, %v975_v48  ;;  %3746 = vmatprep.mubr.msk.f32.mxu1 %vm1393_vm1, %v1324_v44 }
 0x17a   :  { %3747 = vmatmul.mubr.msk.f32.gmra.mrb[70].mxu1 %vm1393_vm1, %v1325_v46  ;;  %v1327_v52 = vmax.f32 %v981_v47, 0.0 }
 0x17b   :  { %v1326_v50 = vmax.f32 %v976_v49, 0.0  ;;  %v3554_v51 = vpop.f32.mrb[74].mxu0 }
 0x17c   :  { %v991_v53 = vadd.f32 %v3554_v51, %v4385_v61  ;;  %v985_v54 = vpop.f32.mrb[75].mxu0 }
 0x17d   :  { %v986_v55 = vadd.f32 %v4385_v61, %v985_v54  ;;  %3749 = vmatprep.mubr.msk.f32.mxu1 %vm1393_vm1, %v1326_v50 }
 0x17e   :  { %3750 = vmatmul.mubr.msk.f32.gmra.mrb[72].mxu1 %vm1393_vm1, %v1327_v52  ;;  %v1329_v58 = vmax.f32 %v991_v53, 0.0 }
 0x17f   :  { %v1328_v56 = vmax.f32 %v986_v55, 0.0  ;;  %v3557_v57 = vpop.f32.mrb[76].mxu0 }
 0x180   :  { %v1001_v59 = vadd.f32 %v3557_v57, %v4385_v61  ;;  %v995_v60 = vpop.f32.mrb[77].mxu0 }
 0x181   :  { %v996_v62 = vadd.f32 %v4385_v61, %v995_v60  ;;  %3752 = vmatprep.mubr.msk.f32.mxu1 %vm1393_vm1, %v1328_v56 }
 0x182   :  { %3753 = vmatmul.mubr.msk.f32.gmra.mrb[74].mxu1 %vm1393_vm1, %v1329_v58  ;;  %v1331_v1 = vmax.f32 %v1001_v59, 0.0 }
 0x183   :  { %v1330_v63 = vmax.f32 %v996_v62, 0.0  ;;  %v3560_v0 = vpop.f32.mrb[78].mxu0 }
 0x184   :  { %v1011_v2 = vadd.f32 %v3560_v0, %v4385_v61  ;;  %v1005_v3 = vpop.f32.mrb[79].mxu0 }
 0x185   :  { %v1006_v4 = vadd.f32 %v4385_v61, %v1005_v3  ;;  %3755 = vmatprep.mubr.msk.f32.mxu1 %vm1393_vm1, %v1330_v63 }
 0x186   :  { %3756 = vmatmul.mubr.msk.f32.gmra.mrb[76].mxu1 %vm1393_vm1, %v1331_v1  ;;  %v1333_v7 = vmax.f32 %v1011_v2, 0.0 }
 0x187   :  { %v1332_v5 = vmax.f32 %v1006_v4, 0.0  ;;  %v3563_v6 = vpop.f32.mrb[80].mxu0 }
 0x188   :  { %v1021_v8 = vadd.f32 %v3563_v6, %v4385_v61  ;;  %v1015_v9 = vpop.f32.mrb[81].mxu0 }
 0x189   :  { %v1016_v10 = vadd.f32 %v4385_v61, %v1015_v9  ;;  %3758 = vmatprep.mubr.msk.f32.mxu1 %vm1393_vm1, %v1332_v5 }
 0x18a   :  { %3759 = vmatmul.mubr.msk.f32.gmra.mrb[78].mxu1 %vm1393_vm1, %v1333_v7  ;;  %v1335_v13 = vmax.f32 %v1021_v8, 0.0 }
 0x18b   :  { %v1334_v11 = vmax.f32 %v1016_v10, 0.0  ;;  %v3566_v12 = vpop.f32.mrb[82].mxu0 }
 0x18c   :  { %v1031_v14 = vadd.f32 %v3566_v12, %v4385_v61  ;;  %v1025_v15 = vpop.f32.mrb[83].mxu0 }
 0x18d   :  { %v1026_v16 = vadd.f32 %v4385_v61, %v1025_v15  ;;  %3761 = vmatprep.mubr.msk.f32.mxu1 %vm1393_vm1, %v1334_v11 }
 0x18e   :  { %3762 = vmatmul.mubr.msk.f32.gmra.mrb[80].mxu1 %vm1393_vm1, %v1335_v13  ;;  %v1337_v19 = vmax.f32 %v1031_v14, 0.0 }
 0x18f   :  { %v1336_v17 = vmax.f32 %v1026_v16, 0.0  ;;  %v3569_v18 = vpop.f32.mrb[84].mxu0 }
 0x190   :  { %v1041_v20 = vadd.f32 %v3569_v18, %v4385_v61  ;;  %v1035_v21 = vpop.f32.mrb[85].mxu0 }
 0x191   :  { %v1036_v22 = vadd.f32 %v4385_v61, %v1035_v21  ;;  %3764 = vmatprep.mubr.msk.f32.mxu1 %vm1393_vm1, %v1336_v17 }
 0x192   :  { %3765 = vmatmul.mubr.msk.f32.gmra.mrb[82].mxu1 %vm1393_vm1, %v1337_v19  ;;  %v1339_v25 = vmax.f32 %v1041_v20, 0.0 }
 0x193   :  { %v1338_v23 = vmax.f32 %v1036_v22, 0.0  ;;  %v3572_v24 = vpop.f32.mrb[86].mxu0 }
 0x194   :  { %v1051_v26 = vadd.f32 %v3572_v24, %v4385_v61  ;;  %v1045_v27 = vpop.f32.mrb[87].mxu0 }
 0x195   :  { %v1046_v28 = vadd.f32 %v4385_v61, %v1045_v27  ;;  %3767 = vmatprep.mubr.msk.f32.mxu1 %vm1393_vm1, %v1338_v23 }
 0x196   :  { %3768 = vmatmul.mubr.msk.f32.gmra.mrb[84].mxu1 %vm1393_vm1, %v1339_v25  ;;  %v1341_v31 = vmax.f32 %v1051_v26, 0.0 }
 0x197   :  { %v1340_v29 = vmax.f32 %v1046_v28, 0.0  ;;  %v3575_v30 = vpop.f32.mrb[88].mxu0 }
 0x198   :  { %v1061_v32 = vadd.f32 %v3575_v30, %v4385_v61  ;;  %v1055_v33 = vpop.f32.mrb[89].mxu0 }
 0x199   :  { %v1056_v34 = vadd.f32 %v4385_v61, %v1055_v33  ;;  %3770 = vmatprep.mubr.msk.f32.mxu1 %vm1393_vm1, %v1340_v29 }
 0x19a   :  { %3771 = vmatmul.mubr.msk.f32.gmra.mrb[86].mxu1 %vm1393_vm1, %v1341_v31  ;;  %v1343_v37 = vmax.f32 %v1061_v32, 0.0  ;;  %v4690_v31 = vld [vmem:[%s4911_s4] ss:$0 sm:$0xff] }
 0x19b   :  { %v1342_v35 = vmax.f32 %v1056_v34, 0.0  ;;  %v3578_v36 = vpop.f32.mrb[90].mxu0 }
 0x19c   :  { %v1071_v38 = vadd.f32 %v3578_v36, %v4385_v61  ;;  %v1065_v39 = vpop.f32.mrb[91].mxu0 }
 0x19d   :  { %v1066_v40 = vadd.f32 %v4385_v61, %v1065_v39  ;;  %3773 = vmatprep.mubr.msk.f32.mxu1 %vm1393_vm1, %v1342_v35 }
 0x19e   :  { %3774 = vmatmul.mubr.msk.f32.gmra.mrb[88].mxu1 %vm1393_vm1, %v1343_v37  ;;  %v1345_v43 = vmax.f32 %v1071_v38, 0.0 }
 0x19f   :  { %v1344_v41 = vmax.f32 %v1066_v40, 0.0  ;;  %v3581_v42 = vpop.f32.mrb[92].mxu0 }
 0x1a0   :  { %v1081_v44 = vadd.f32 %v3581_v42, %v4385_v61  ;;  %v1075_v45 = vpop.f32.mrb[93].mxu0 }
 0x1a1   :  { %v1076_v46 = vadd.f32 %v4385_v61, %v1075_v45  ;;  %3776 = vmatprep.mubr.msk.f32.mxu1 %vm1393_vm1, %v1344_v41 }
 0x1a2   :  { %3777 = vmatmul.mubr.msk.f32.gmra.mrb[90].mxu1 %vm1393_vm1, %v1345_v43  ;;  %v1347_v49 = vmax.f32 %v1081_v44, 0.0 }
 0x1a3   :  { %v1346_v47 = vmax.f32 %v1076_v46, 0.0  ;;  %v3584_v48 = vpop.f32.mrb[94].mxu0 }
 0x1a4   :  { %v1091_v50 = vadd.f32 %v3584_v48, %v4385_v61  ;;  %v1085_v51 = vpop.f32.mrb[95].mxu0 }
 0x1a5   :  { %v1086_v52 = vadd.f32 %v4385_v61, %v1085_v51  ;;  %3779 = vmatprep.mubr.msk.f32.mxu1 %vm1393_vm1, %v1346_v47 }
 0x1a6   :  { %3780 = vmatmul.mubr.msk.f32.gmra.mrb[92].mxu1 %vm1393_vm1, %v1347_v49  ;;  %v1349_v55 = vmax.f32 %v1091_v50, 0.0 }
 0x1a7   :  { %v1348_v53 = vmax.f32 %v1086_v52, 0.0  ;;  %v3587_v54 = vpop.f32.mrb[96].mxu0 }
 0x1a8   :  { %v1101_v56 = vadd.f32 %v3587_v54, %v4385_v61  ;;  %v1095_v57 = vpop.f32.mrb[97].mxu0 }
 0x1a9   :  { %v1096_v58 = vadd.f32 %v4385_v61, %v1095_v57  ;;  %3782 = vmatprep.mubr.msk.f32.mxu1 %vm1393_vm1, %v1348_v53 }
 0x1aa   :  { %3783 = vmatmul.mubr.msk.f32.gmra.mrb[94].mxu1 %vm1393_vm1, %v1349_v55  ;;  %v1351_v62 = vmax.f32 %v1101_v56, 0.0 }
 0x1ab   :  { %v1350_v59 = vmax.f32 %v1096_v58, 0.0  ;;  %v3590_v60 = vpop.f32.mrb[98].mxu0 }
 0x1ac   :  { %v1111_v63 = vadd.f32 %v3590_v60, %v4385_v61  ;;  %v1105_v0 = vpop.f32.mrb[99].mxu0 }
 0x1ad   :  { %v1106_v1 = vadd.f32 %v4385_v61, %v1105_v0  ;;  %3785 = vmatprep.mubr.msk.f32.mxu1 %vm1393_vm1, %v1350_v59  ;;  %v4709_v59 = vld [vmem:[%s4909_s2] ss:$0 sm:$0xff] }
 0x1ae   :  { %3786 = vmatmul.mubr.msk.f32.gmra.mrb[96].mxu1 %vm1393_vm1, %v1351_v62  ;;  %v1353_v4 = vmax.f32 %v1111_v63, 0.0 }
 0x1af   :  { %v1352_v2 = vmax.f32 %v1106_v1, 0.0  ;;  %v3593_v3 = vpop.f32.mrb[100].mxu0 }
 0x1b0   :  { %v1121_v5 = vadd.f32 %v3593_v3, %v4385_v61  ;;  %v1115_v6 = vpop.f32.mrb[101].mxu0 }
 0x1b1   :  { %v1116_v7 = vadd.f32 %v4385_v61, %v1115_v6  ;;  %3788 = vmatprep.mubr.msk.f32.mxu1 %vm1393_vm1, %v1352_v2 }
 0x1b2   :  { %3789 = vmatmul.mubr.msk.f32.gmra.mrb[98].mxu1 %vm1393_vm1, %v1353_v4  ;;  %v1355_v10 = vmax.f32 %v1121_v5, 0.0 }
 0x1b3   :  { %v1354_v8 = vmax.f32 %v1116_v7, 0.0  ;;  %v3596_v9 = vpop.f32.mrb[102].mxu0 }
 0x1b4   :  { %v1131_v11 = vadd.f32 %v3596_v9, %v4385_v61  ;;  %v1125_v12 = vpop.f32.mrb[103].mxu0 }
 0x1b5   :  { %v1126_v13 = vadd.f32 %v4385_v61, %v1125_v12  ;;  %3791 = vmatprep.mubr.msk.f32.mxu1 %vm1393_vm1, %v1354_v8 }
 0x1b6   :  { %3792 = vmatmul.mubr.msk.f32.gmra.mrb[100].mxu1 %vm1393_vm1, %v1355_v10  ;;  %v1357_v16 = vmax.f32 %v1131_v11, 0.0 }
 0x1b7   :  { %v1356_v14 = vmax.f32 %v1126_v13, 0.0  ;;  %v3599_v15 = vpop.f32.mrb[104].mxu0 }
 0x1b8   :  { %v1141_v17 = vadd.f32 %v3599_v15, %v4385_v61  ;;  %v1135_v18 = vpop.f32.mrb[105].mxu0 }
 0x1b9   :  { %v1136_v19 = vadd.f32 %v4385_v61, %v1135_v18  ;;  %3794 = vmatprep.mubr.msk.f32.mxu1 %vm1393_vm1, %v1356_v14 }
 0x1ba   :  { %3795 = vmatmul.mubr.msk.f32.gmra.mrb[102].mxu1 %vm1393_vm1, %v1357_v16  ;;  %v1359_v22 = vmax.f32 %v1141_v17, 0.0 }
 0x1bb   :  { %v1358_v20 = vmax.f32 %v1136_v19, 0.0  ;;  %v3602_v21 = vpop.f32.mrb[106].mxu0 }
 0x1bc   :  { %v1151_v23 = vadd.f32 %v3602_v21, %v4385_v61  ;;  %v1145_v24 = vpop.f32.mrb[107].mxu0 }
 0x1bd   :  { %v1146_v25 = vadd.f32 %v4385_v61, %v1145_v24  ;;  %3797 = vmatprep.mubr.msk.f32.mxu1 %vm1393_vm1, %v1358_v20 }
 0x1be   :  { %3798 = vmatmul.mubr.msk.f32.gmra.mrb[104].mxu1 %vm1393_vm1, %v1359_v22  ;;  %v1361_v28 = vmax.f32 %v1151_v23, 0.0 }
 0x1bf   :  { %v1360_v26 = vmax.f32 %v1146_v25, 0.0  ;;  %v3605_v27 = vpop.f32.mrb[108].mxu0 }
 0x1c0   :  { %v1161_v29 = vadd.f32 %v3605_v27, %v4385_v61  ;;  %v1155_v30 = vpop.f32.mrb[109].mxu0 }
 0x1c1   :  { %v1156_v32 = vadd.f32 %v4385_v61, %v1155_v30  ;;  %v3643_v33 = vpop.f32.mrb[0].mxu1  ;;  %3800 = vmatprep.mubr.msk.f32.mxu1 %vm1393_vm1, %v1360_v26 }
 0x1c2   :  { %v1844_v34 = vpop.f32.mrb[1].mxu1  ;;  %3801 = vmatmul.mubr.msk.f32.gmra.mrb[106].mxu1 %vm1393_vm1, %v1361_v28  ;;  %v1363_v38 = vmax.f32 %v1161_v29, 0.0  ;;  %v1850_v41 = vadd.f32 %v3643_v33, %v4690_v31 }
 0x1c3   :  { %v1362_v35 = vmax.f32 %v1156_v32, 0.0  ;;  %v3608_v36 = vpop.f32.mrb[110].mxu0  ;;  %v1845_v37 = vadd.f32 %v4690_v31, %v1844_v34 }
 0x1c4   :  { %v1171_v39 = vadd.f32 %v3608_v36, %v4385_v61  ;;  %v1165_v40 = vpop.f32.mrb[111].mxu0  ;;  %v2484_v51 = vmax.f32 %v1850_v41, 0.0 }
 0x1c5   :  { %v1166_v42 = vadd.f32 %v4385_v61, %v1165_v40  ;;  %v3646_v43 = vpop.f32.mrb[2].mxu1  ;;  %3803 = vmatprep.mubr.msk.f32.mxu1 %vm1393_vm1, %v1362_v35  ;;  %v2483_v44 = vmax.f32 %v1845_v37, 0.0 }
 0x1c6   :  { %v1854_v45 = vpop.f32.mrb[3].mxu1  ;;  %3804 = vmatmul.mubr.msk.f32.gmra.mrb[108].mxu1 %vm1393_vm1, %v1363_v38  ;;  %v1365_v48 = vmax.f32 %v1171_v39, 0.0 }
 0x1c7   :  { %v1364_v46 = vmax.f32 %v1166_v42, 0.0  ;;  %v3611_v47 = vpop.f32.mrb[112].mxu0  ;;  %2611 = vxpose.xlu0.b32.start [1/16] (narrow) %v2483_v44, 16  ;;  %v1855_v52 = vadd.f32 %v4690_v31, %v1854_v45 }
 0x1c8   :  { %v1181_v49 = vadd.f32 %v3611_v47, %v4385_v61  ;;  %v1175_v50 = vpop.f32.mrb[113].mxu0 }
 0x1c9   :  { %v1176_v53 = vadd.f32 %v4385_v61, %v1175_v50  ;;  %v3649_v54 = vpop.f32.mrb[4].mxu1  ;;  %3806 = vmatprep.mubr.msk.f32.mxu1 %vm1393_vm1, %v1364_v46  ;;  %v1860_v61 = vadd.f32 %v3646_v43, %v4690_v31  ;;  %v2485_v63 = vmax.f32 %v1855_v52, 0.0 }
 0x1ca   :  { %v1864_v55 = vpop.f32.mrb[5].mxu1  ;;  %3807 = vmatmul.mubr.msk.f32.gmra.mrb[110].mxu1 %vm1393_vm1, %v1365_v48  ;;  %v1367_v58 = vmax.f32 %v1181_v49, 0.0  ;;  %v1870_v18 = vadd.f32 %v3649_v54, %v4690_v31 }
 0x1cb   :  { %v1366_v56 = vmax.f32 %v1176_v53, 0.0  ;;  %2612 = vxpose.xlu0.b32.cont [2/16] (narrow) %v2484_v51, 16  ;;  %v3614_v57 = vpop.f32.mrb[114].mxu0  ;;  %v2486_v8 = vmax.f32 %v1860_v61, 0.0  ;;  %v1865_v9 = vadd.f32 %v4690_v31, %v1864_v55 }
 0x1cc   :  { %v1191_v60 = vadd.f32 %v4709_v59, %v3614_v57  ;;  %v1185_v62 = vpop.f32.mrb[115].mxu0  ;;  %v2488_v28 = vmax.f32 %v1870_v18, 0.0 }
 0x1cd   :  { %v1186_v0 = vadd.f32 %v4709_v59, %v1185_v62  ;;  %v3652_v1 = vpop.f32.mrb[6].mxu1  ;;  %3809 = vmatprep.mubr.msk.f32.mxu1 %vm1393_vm1, %v1366_v56  ;;  %v2487_v19 = vmax.f32 %v1865_v9, 0.0 }
 0x1ce   :  { %v1369_v2 = vmax.f32 %v1191_v60, 0.0  ;;  %v1874_v3 = vpop.f32.mrb[7].mxu1  ;;  %3810 = vmatmul.mubr.msk.f32.gmra.mrb[112].mxu1 %vm1393_vm1, %v1367_v58  ;;  %v1880_v39 = vadd.f32 %v3652_v1, %v4690_v31 }
 0x1cf   :  { %v1368_v4 = vmax.f32 %v1186_v0, 0.0  ;;  %2613 = vxpose.xlu0.b32.cont [3/16] (narrow) %v2485_v63, 16  ;;  %v3617_v5 = vpop.f32.mrb[116].mxu0  ;;  %v1875_v29 = vadd.f32 %v4690_v31, %v1874_v3 }
 0x1d0   :  { %v1201_v6 = vadd.f32 %v4709_v59, %v3617_v5  ;;  %v1195_v7 = vpop.f32.mrb[117].mxu0  ;;  %v2490_v49 = vmax.f32 %v1880_v39, 0.0 }
 0x1d1   :  { %v3655_v10 = vpop.f32.mrb[8].mxu1  ;;  %3812 = vmatprep.mubr.msk.f32.mxu1 %vm1393_vm1, %v1368_v4  ;;  %v1196_v11 = vadd.f32 %v4709_v59, %v1195_v7  ;;  %v2489_v40 = vmax.f32 %v1875_v29, 0.0 }
 0x1d2   :  { %v1884_v12 = vpop.f32.mrb[9].mxu1  ;;  %3813 = vmatmul.mubr.msk.f32.gmra.mrb[114].mxu1 %vm1393_vm1, %v1369_v2  ;;  %v1371_v13 = vmax.f32 %v1201_v6, 0.0  ;;  %v1890_v58 = vadd.f32 %v3655_v10, %v4690_v31 }
 0x1d3   :  { %2614 = vxpose.xlu0.b32.cont [4/16] (narrow) %v2486_v8, 16  ;;  %v1370_v14 = vmax.f32 %v1196_v11, 0.0  ;;  %v3620_v15 = vpop.f32.mrb[118].mxu0  ;;  %v1885_v50 = vadd.f32 %v4690_v31, %v1884_v12 }
 0x1d4   :  { %v1211_v16 = vadd.f32 %v4709_v59, %v3620_v15  ;;  %v1205_v17 = vpop.f32.mrb[119].mxu0  ;;  %v2492_v6 = vmax.f32 %v1890_v58, 0.0 }
 0x1d5   :  { %v4723_v20 = vpop.f32.mrb[10].mxu1  ;;  %3815 = vmatprep.mubr.msk.f32.mxu1 %vm1393_vm1, %v1370_v14  ;;  %v1206_v21 = vadd.f32 %v4709_v59, %v1205_v17  ;;  %v2491_v61 = vmax.f32 %v1885_v50, 0.0 }
 0x1d6   :  { %v1894_v22 = vpop.f32.mrb[11].mxu1  ;;  %3816 = vmatmul.mubr.msk.f32.gmra.mrb[116].mxu1 %vm1393_vm1, %v1371_v13  ;;  %v1373_v23 = vmax.f32 %v1211_v16, 0.0 }
 0x1d7   :  { %2615 = vxpose.xlu0.b32.cont [5/16] (narrow) %v2487_v19, 16  ;;  %v1372_v24 = vmax.f32 %v1206_v21, 0.0  ;;  %v3623_v25 = vpop.f32.mrb[120].mxu0  ;;  %v1895_v7 = vadd.f32 %v4690_v31, %v1894_v22 }
 0x1d8   :  { %v1221_v26 = vadd.f32 %v4709_v59, %v3623_v25  ;;  %v1215_v27 = vpop.f32.mrb[121].mxu0 }
 0x1d9   :  { %v4730_v30 = vpop.f32.mrb[12].mxu1  ;;  %3818 = vmatprep.mubr.msk.f32.mxu1 %vm1393_vm1, %v1372_v24  ;;  %v1216_v32 = vadd.f32 %v4709_v59, %v1215_v27  ;;  %v2493_v12 = vmax.f32 %v1895_v7, 0.0 }
 0x1da   :  { %v4734_v33 = vpop.f32.mrb[13].mxu1  ;;  %3819 = vmatmul.mubr.msk.f32.gmra.mrb[118].mxu1 %vm1393_vm1, %v1373_v23  ;;  %v1375_v34 = vmax.f32 %v1221_v26, 0.0 }
 0x1db   :  { %2616 = vxpose.xlu0.b32.cont [6/16] (narrow) %v2488_v28, 16  ;;  %v1374_v35 = vmax.f32 %v1216_v32, 0.0  ;;  %v3626_v36 = vpop.f32.mrb[122].mxu0  ;;  %v1905_v18 = vadd.f32 %v4690_v31, %v4734_v33 }
 0x1dc   :  { %v1231_v37 = vadd.f32 %v4709_v59, %v3626_v36  ;;  %v1225_v38 = vpop.f32.mrb[123].mxu0 }
 0x1dd   :  { %v4739_v41 = vpop.f32.mrb[14].mxu1  ;;  %3821 = vmatprep.mubr.msk.f32.mxu1 %vm1393_vm1, %v1374_v35  ;;  %v1226_v42 = vadd.f32 %v4709_v59, %v1225_v38  ;;  %v2495_v24 = vmax.f32 %v1905_v18, 0.0 }
 0x1de   :  { %v4743_v43 = vpop.f32.mrb[15].mxu1  ;;  %3822 = vmatmul.mubr.msk.f32.gmra.mrb[120].mxu1 %vm1393_vm1, %v1375_v34  ;;  %v1377_v44 = vmax.f32 %v1231_v37, 0.0 }
 0x1df   :  { %2617 = vxpose.xlu0.b32.cont [7/16] (narrow) %v2489_v40, 16  ;;  %v1376_v45 = vmax.f32 %v1226_v42, 0.0  ;;  %v3629_v46 = vpop.f32.mrb[124].mxu0  ;;  %v1915_v32 = vadd.f32 %v4690_v31, %v4743_v43 }
 0x1e0   :  { %v1241_v47 = vadd.f32 %v4709_v59, %v3629_v46  ;;  %v1235_v48 = vpop.f32.mrb[125].mxu0 }
 0x1e1   :  { %v3667_v51 = vpop.f32.mrb[16].mxu1  ;;  %3824 = vmatprep.mubr.msk.f32.mxu1 %vm1393_vm1, %v1376_v45  ;;  %v1236_v52 = vadd.f32 %v4709_v59, %v1235_v48  ;;  %v2497_v37 = vmax.f32 %v1915_v32, 0.0 }
 0x1e2   :  { %v1924_v53 = vpop.f32.mrb[17].mxu1  ;;  %3825 = vmatmul.mubr.msk.f32.gmra.mrb[122].mxu1 %vm1393_vm1, %v1377_v44  ;;  %v1379_v54 = vmax.f32 %v1241_v47, 0.0  ;;  %v1930_v63 = vadd.f32 %v3667_v51, %v4690_v31 }
 0x1e3   :  { %2618 = vxpose.xlu0.b32.cont [8/16] (narrow) %v2490_v49, 16  ;;  %v1925_v55 = vadd.f32 %v4690_v31, %v1924_v53  ;;  %v1378_v56 = vmax.f32 %v1236_v52, 0.0  ;;  %v3632_v57 = vpop.f32.mrb[126].mxu0 }
 0x1e4   :  { %v1251_v60 = vadd.f32 %v4709_v59, %v3632_v57  ;;  %v1245_v62 = vpop.f32.mrb[127].mxu0  ;;  %v2500_v8 = vmax.f32 %v1930_v63, 0.0 }
 0x1e5   :  { %v3670_v0 = vpop.f32.mrb[18].mxu1  ;;  %v2499_v1 = vmax.f32 %v1925_v55, 0.0  ;;  %3827 = vmatprep.mubr.msk.f32.mxu1 %vm1393_vm1, %v1378_v56  ;;  %v1246_v2 = vadd.f32 %v4709_v59, %v1245_v62  ;;  %v1900_v59 = vadd.f32 %v4723_v20, %v4690_v31  ;;  %v1910_v20 = vadd.f32 %v4730_v30, %v4690_v31 }
 0x1e6   :  { %v1934_v3 = vpop.f32.mrb[19].mxu1  ;;  %3828 = vmatmul.mubr.msk.f32.gmra.mrb[124].mxu1 %vm1393_vm1, %v1379_v54  ;;  %v1381_v4 = vmax.f32 %v1251_v60, 0.0  ;;  %v1940_v13 = vadd.f32 %v3670_v0, %v4690_v31  ;;  %v1920_v30 = vadd.f32 %v4739_v41, %v4690_v31 }
 0x1e7   :  { %2643 = vxpose.xlu1.b32.start [1/16] (narrow) %v2499_v1, 16  ;;  %2619 = vxpose.xlu0.b32.cont [9/16] (narrow) %v2491_v61, 16  ;;  %v1380_v5 = vmax.f32 %v1246_v2, 0.0  ;;  %v1935_v9 = vadd.f32 %v4690_v31, %v1934_v3  ;;  %v2494_v17 = vmax.f32 %v1900_v59, 0.0  ;;  %v2496_v29 = vmax.f32 %v1910_v20, 0.0 }
 0x1e8   :  { %v2502_v19 = vmax.f32 %v1940_v13, 0.0  ;;  %v2498_v44 = vmax.f32 %v1920_v30, 0.0 }
 0x1e9   :  { %v3673_v10 = vpop.f32.mrb[20].mxu1  ;;  %3830 = vmatprep.mubr.msk.f32.mxu1 %vm1393_vm1, %v1380_v5  ;;  %v2501_v14 = vmax.f32 %v1935_v9, 0.0 }
 0x1ea   :  { %v1944_v11 = vpop.f32.mrb[21].mxu1  ;;  %3831 = vmatmul.mubr.msk.f32.gmra.mrb[126].mxu1 %vm1393_vm1, %v1381_v4  ;;  %v1950_v25 = vadd.f32 %v3673_v10, %v4690_v31 }
 0x1eb   :  { %2644 = vxpose.xlu1.b32.cont [2/16] (narrow) %v2500_v8, 16  ;;  %2620 = vxpose.xlu0.b32.cont [10/16] (narrow) %v2492_v6, 16  ;;  %v1945_v21 = vadd.f32 %v4690_v31, %v1944_v11 }
 0x1ec   :  { %v2504_v33 = vmax.f32 %v1950_v25, 0.0 }
 0x1ed   :  { %v3676_v15 = vpop.f32.mrb[22].mxu1  ;;  %v2503_v26 = vmax.f32 %v1945_v21, 0.0 }
 0x1ee   :  { %v1954_v16 = vpop.f32.mrb[23].mxu1  ;;  %v1960_v38 = vadd.f32 %v3676_v15, %v4690_v31 }
 0x1ef   :  { %2645 = vxpose.xlu1.b32.cont [3/16] (narrow) %v2501_v14, 16  ;;  %2621 = vxpose.xlu0.b32.cont [11/16] (narrow) %v2493_v12, 16  ;;  %v1955_v34 = vadd.f32 %v4690_v31, %v1954_v16 }
 0x1f0   :  { %v2506_v43 = vmax.f32 %v1960_v38, 0.0 }
 0x1f1   :  { %v3679_v22 = vpop.f32.mrb[24].mxu1  ;;  %v2505_v39 = vmax.f32 %v1955_v34, 0.0 }
 0x1f2   :  { %v1964_v23 = vpop.f32.mrb[25].mxu1  ;;  %v1970_v41 = vadd.f32 %v3679_v22, %v4690_v31 }
 0x1f3   :  { %2646 = vxpose.xlu1.b32.cont [4/16] (narrow) %v2502_v19, 16  ;;  %2622 = vxpose.xlu0.b32.cont [12/16] (narrow) %v2494_v17, 16  ;;  %v1965_v45 = vadd.f32 %v4690_v31, %v1964_v23 }
 0x1f4   :  { %v2508_v54 = vmax.f32 %v1970_v41, 0.0 }
 0x1f5   :  { %v3682_v27 = vpop.f32.mrb[26].mxu1  ;;  %v2507_v49 = vmax.f32 %v1965_v45, 0.0 }
 0x1f6   :  { %v1974_v28 = vpop.f32.mrb[27].mxu1  ;;  %v1980_v62 = vadd.f32 %v3682_v27, %v4690_v31 }
 0x1f7   :  { %2647 = vxpose.xlu1.b32.cont [5/16] (narrow) %v2503_v26, 16  ;;  %2623 = vxpose.xlu0.b32.cont [13/16] (narrow) %v2495_v24, 16  ;;  %v1975_v55 = vadd.f32 %v4690_v31, %v1974_v28 }
 0x1f8   :  { %v2510_v3 = vmax.f32 %v1980_v62, 0.0 }
 0x1f9   :  { %v3685_v35 = vpop.f32.mrb[28].mxu1  ;;  %v2509_v61 = vmax.f32 %v1975_v55, 0.0 }
 0x1fa   :  { %v1984_v36 = vpop.f32.mrb[29].mxu1  ;;  %v1990_v9 = vadd.f32 %v3685_v35, %v4690_v31 }
 0x1fb   :  { %2648 = vxpose.xlu1.b32.cont [6/16] (narrow) %v2504_v33, 16  ;;  %2624 = vxpose.xlu0.b32.cont [14/16] (narrow) %v2496_v29, 16  ;;  %v1985_v4 = vadd.f32 %v4690_v31, %v1984_v36 }
 0x1fc   :  { %v2512_v14 = vmax.f32 %v1990_v9, 0.0 }
 0x1fd   :  { %v3688_v40 = vpop.f32.mrb[30].mxu1  ;;  %v2511_v10 = vmax.f32 %v1985_v4, 0.0 }
 0x1fe   :  { %v1994_v42 = vpop.f32.mrb[31].mxu1  ;;  %v2000_v21 = vadd.f32 %v3688_v40, %v4690_v31 }
 0x1ff   :  { %2649 = vxpose.xlu1.b32.cont [7/16] (narrow) %v2505_v39, 16  ;;  %2625 = vxpose.xlu0.b32.cont [15/16] (narrow) %v2497_v37, 16  ;;  %v1995_v15 = vadd.f32 %v4690_v31, %v1994_v42 }
 0x200   :  { %v2514_v26 = vmax.f32 %v2000_v21, 0.0 }
 0x201   :  { %v3691_v46 = vpop.f32.mrb[32].mxu1  ;;  %v2513_v22 = vmax.f32 %v1995_v15, 0.0 }
 0x202   :  { %v2004_v47 = vpop.f32.mrb[33].mxu1  ;;  %v2010_v50 = vadd.f32 %v3691_v46, %v4690_v31 }
 0x203   :  { %v2005_v48 = vadd.f32 %v4690_v31, %v2004_v47  ;;  %2650 = vxpose.xlu1.b32.cont [8/16] (narrow) %v2506_v43, 16  ;;  %2626 = vxpose.xlu0.b32.end [16/16] (narrow) %v2498_v44, 16 }
 0x204   :  { %v2516_v56 = vmax.f32 %v2010_v50, 0.0 }
 0x205   :  { %v2515_v51 = vmax.f32 %v2005_v48, 0.0  ;;  %v3694_v52 = vpop.f32.mrb[34].mxu1 }
 0x206   :  { %v2014_v53 = vpop.f32.mrb[35].mxu1  ;;  %v2020_v63 = vadd.f32 %v3694_v52, %v4690_v31 }
 0x207   :  { %2651 = vxpose.xlu1.b32.cont [9/16] (narrow) %v2507_v49, 16  ;;  %2675 = vxpose.xlu0.b32.start [1/16] (narrow) %v2515_v51, 16  ;;  %v2015_v57 = vadd.f32 %v4690_v31, %v2014_v53 }
 0x208   :  { %v2518_v5 = vmax.f32 %v2020_v63, 0.0 }
 0x209   :  { %v3697_v58 = vpop.f32.mrb[36].mxu1  ;;  %v2517_v0 = vmax.f32 %v2015_v57, 0.0 }
 0x20a   :  { %v2024_v60 = vpop.f32.mrb[37].mxu1  ;;  %v2030_v11 = vadd.f32 %v3697_v58, %v4690_v31 }
 0x20b   :  { %2652 = vxpose.xlu1.b32.cont [10/16] (narrow) %v2508_v54, 16  ;;  %2676 = vxpose.xlu0.b32.cont [2/16] (narrow) %v2516_v56, 16  ;;  %v2025_v6 = vadd.f32 %v4690_v31, %v2024_v60 }
 0x20c   :  { %v2520_v16 = vmax.f32 %v2030_v11, 0.0 }
 0x20d   :  { %v3700_v1 = vpop.f32.mrb[38].mxu1  ;;  %v2519_v59 = vmax.f32 %v2025_v6, 0.0 }
 0x20e   :  { %v2034_v2 = vpop.f32.mrb[39].mxu1  ;;  %v2040_v23 = vadd.f32 %v3700_v1, %v4690_v31 }
 0x20f   :  { %2653 = vxpose.xlu1.b32.cont [11/16] (narrow) %v2509_v61, 16  ;;  %2677 = vxpose.xlu0.b32.cont [3/16] (narrow) %v2517_v0, 16  ;;  %v2035_v17 = vadd.f32 %v4690_v31, %v2034_v2 }
 0x210   :  { %v2522_v27 = vmax.f32 %v2040_v23, 0.0 }
 0x211   :  { %v3703_v7 = vpop.f32.mrb[40].mxu1  ;;  %v2521_v20 = vmax.f32 %v2035_v17, 0.0 }
 0x212   :  { %v2044_v8 = vpop.f32.mrb[41].mxu1  ;;  %v2050_v34 = vadd.f32 %v3703_v7, %v4690_v31 }
 0x213   :  { %2654 = vxpose.xlu1.b32.cont [12/16] (narrow) %v2510_v3, 16  ;;  %2678 = vxpose.xlu0.b32.cont [4/16] (narrow) %v2518_v5, 16  ;;  %v2045_v28 = vadd.f32 %v4690_v31, %v2044_v8 }
 0x214   :  { %v2524_v39 = vmax.f32 %v2050_v34, 0.0 }
 0x215   :  { %v3706_v12 = vpop.f32.mrb[42].mxu1  ;;  %v2523_v35 = vmax.f32 %v2045_v28, 0.0 }
 0x216   :  { %v2054_v13 = vpop.f32.mrb[43].mxu1  ;;  %v2060_v46 = vadd.f32 %v3706_v12, %v4690_v31 }
 0x217   :  { %2655 = vxpose.xlu1.b32.cont [13/16] (narrow) %v2511_v10, 16  ;;  %2679 = vxpose.xlu0.b32.cont [5/16] (narrow) %v2519_v59, 16  ;;  %v2055_v40 = vadd.f32 %v4690_v31, %v2054_v13 }
 0x218   :  { %v2526_v51 = vmax.f32 %v2060_v46, 0.0 }
 0x219   :  { %v3709_v18 = vpop.f32.mrb[44].mxu1  ;;  %v2525_v47 = vmax.f32 %v2055_v40, 0.0 }
 0x21a   :  { %v2064_v19 = vpop.f32.mrb[45].mxu1  ;;  %v2070_v57 = vadd.f32 %v3709_v18, %v4690_v31 }
 0x21b   :  { %2656 = vxpose.xlu1.b32.cont [14/16] (narrow) %v2512_v14, 16  ;;  %2680 = vxpose.xlu0.b32.cont [6/16] (narrow) %v2520_v16, 16  ;;  %v2065_v52 = vadd.f32 %v4690_v31, %v2064_v19 }
 0x21c   :  { %v2528_v0 = vmax.f32 %v2070_v57, 0.0 }
 0x21d   :  { %v3712_v24 = vpop.f32.mrb[46].mxu1  ;;  %v2527_v58 = vmax.f32 %v2065_v52, 0.0 }
 0x21e   :  { %v2074_v25 = vpop.f32.mrb[47].mxu1  ;;  %v2080_v6 = vadd.f32 %v3712_v24, %v4690_v31 }
 0x21f   :  { %2657 = vxpose.xlu1.b32.cont [15/16] (narrow) %v2513_v22, 16  ;;  %2681 = vxpose.xlu0.b32.cont [7/16] (narrow) %v2521_v20, 16  ;;  %v2075_v1 = vadd.f32 %v4690_v31, %v2074_v25 }
 0x220   :  { %v2530_v59 = vmax.f32 %v2080_v6, 0.0 }
 0x221   :  { %v3715_v29 = vpop.f32.mrb[48].mxu1  ;;  %v2529_v7 = vmax.f32 %v2075_v1, 0.0 }
 0x222   :  { %v2084_v32 = vpop.f32.mrb[49].mxu1  ;;  %v2090_v36 = vadd.f32 %v3715_v29, %v4690_v31 }
 0x223   :  { %v2085_v33 = vadd.f32 %v4690_v31, %v2084_v32  ;;  %2658 = vxpose.xlu1.b32.end [16/16] (narrow) %v2514_v26, 16  ;;  %2682 = vxpose.xlu0.b32.cont [8/16] (narrow) %v2522_v27, 16 }
 0x224   :  { %v2532_v42 = vmax.f32 %v2090_v36, 0.0 }
 0x225   :  { %v2531_v30 = vmax.f32 %v2085_v33, 0.0  ;;  %v3718_v37 = vpop.f32.mrb[50].mxu1 }
 0x226   :  { %v2094_v38 = vpop.f32.mrb[51].mxu1  ;;  %v2100_v48 = vadd.f32 %v3718_v37, %v4690_v31 }
 0x227   :  { %2707 = vxpose.xlu1.b32.start [1/16] (narrow) %v2531_v30, 16  ;;  %2683 = vxpose.xlu0.b32.cont [9/16] (narrow) %v2523_v35, 16  ;;  %v2095_v44 = vadd.f32 %v4690_v31, %v2094_v38 }
 0x228   :  { %v2534_v53 = vmax.f32 %v2100_v48, 0.0 }
 0x229   :  { %v3721_v43 = vpop.f32.mrb[52].mxu1  ;;  %v2533_v41 = vmax.f32 %v2095_v44, 0.0 }
 0x22a   :  { %v2104_v45 = vpop.f32.mrb[53].mxu1  ;;  %v2110_v60 = vadd.f32 %v3721_v43, %v4690_v31 }
 0x22b   :  { %2708 = vxpose.xlu1.b32.cont [2/16] (narrow) %v2532_v42, 16  ;;  %2684 = vxpose.xlu0.b32.cont [10/16] (narrow) %v2524_v39, 16  ;;  %v2105_v54 = vadd.f32 %v4690_v31, %v2104_v45 }
 0x22c   :  { %v2536_v2 = vmax.f32 %v2110_v60, 0.0 }
 0x22d   :  { %v3724_v49 = vpop.f32.mrb[54].mxu1  ;;  %v2535_v62 = vmax.f32 %v2105_v54, 0.0 }
 0x22e   :  { %v2114_v50 = vpop.f32.mrb[55].mxu1  ;;  %v2120_v8 = vadd.f32 %v3724_v49, %v4690_v31 }
 0x22f   :  { %2709 = vxpose.xlu1.b32.cont [3/16] (narrow) %v2533_v41, 16  ;;  %2685 = vxpose.xlu0.b32.cont [11/16] (narrow) %v2525_v47, 16  ;;  %v2115_v3 = vadd.f32 %v4690_v31, %v2114_v50 }
 0x230   :  { %v2538_v12 = vmax.f32 %v2120_v8, 0.0 }
 0x231   :  { %v3727_v55 = vpop.f32.mrb[56].mxu1  ;;  %v2537_v9 = vmax.f32 %v2115_v3, 0.0 }
 0x232   :  { %v2124_v56 = vpop.f32.mrb[57].mxu1  ;;  %v2130_v17 = vadd.f32 %v3727_v55, %v4690_v31 }
 0x233   :  { %2710 = vxpose.xlu1.b32.cont [4/16] (narrow) %v2534_v53, 16  ;;  %2686 = vxpose.xlu0.b32.cont [12/16] (narrow) %v2526_v51, 16  ;;  %v2125_v13 = vadd.f32 %v4690_v31, %v2124_v56 }
 0x234   :  { %v2540_v20 = vmax.f32 %v2130_v17, 0.0 }
 0x235   :  { %v3730_v61 = vpop.f32.mrb[58].mxu1  ;;  %v2539_v18 = vmax.f32 %v2125_v13, 0.0 }
 0x236   :  { %v2134_v63 = vpop.f32.mrb[59].mxu1  ;;  %v2140_v29 = vadd.f32 %v3730_v61, %v4690_v31 }
 0x237   :  { %2711 = vxpose.xlu1.b32.cont [5/16] (narrow) %v2535_v62, 16  ;;  %2687 = vxpose.xlu0.b32.cont [13/16] (narrow) %v2527_v58, 16  ;;  %v2135_v24 = vadd.f32 %v4690_v31, %v2134_v63 }
 0x238   :  { %v2542_v30 = vmax.f32 %v2140_v29, 0.0 }
 0x239   :  { %v3733_v4 = vpop.f32.mrb[60].mxu1  ;;  %v2541_v32 = vmax.f32 %v2135_v24, 0.0 }
 0x23a   :  { %v2144_v5 = vpop.f32.mrb[61].mxu1  ;;  %v2150_v44 = vadd.f32 %v3733_v4, %v4690_v31 }
 0x23b   :  { %2712 = vxpose.xlu1.b32.cont [6/16] (narrow) %v2536_v2, 16  ;;  %2688 = vxpose.xlu0.b32.cont [14/16] (narrow) %v2528_v0, 16  ;;  %v2145_v37 = vadd.f32 %v4690_v31, %v2144_v5 }
 0x23c   :  { %v2544_v41 = vmax.f32 %v2150_v44, 0.0 }
 0x23d   :  { %v3736_v10 = vpop.f32.mrb[62].mxu1  ;;  %v2543_v43 = vmax.f32 %v2145_v37, 0.0 }
 0x23e   :  { %v2154_v11 = vpop.f32.mrb[63].mxu1  ;;  %v2160_v54 = vadd.f32 %v3736_v10, %v4690_v31 }
 0x23f   :  { %2713 = vxpose.xlu1.b32.cont [7/16] (narrow) %v2537_v9, 16  ;;  %2689 = vxpose.xlu0.b32.cont [15/16] (narrow) %v2529_v7, 16  ;;  %v2155_v49 = vadd.f32 %v4690_v31, %v2154_v11 }
 0x240   :  { %v2546_v62 = vmax.f32 %v2160_v54, 0.0 }
 0x241   :  { %v3739_v14 = vpop.f32.mrb[64].mxu1  ;;  %v2545_v55 = vmax.f32 %v2155_v49, 0.0 }
 0x242   :  { %v2164_v15 = vpop.f32.mrb[65].mxu1  ;;  %v2170_v19 = vadd.f32 %v3739_v14, %v4690_v31 }
 0x243   :  { %v2165_v16 = vadd.f32 %v4690_v31, %v2164_v15  ;;  %2714 = vxpose.xlu1.b32.cont [8/16] (narrow) %v2538_v12, 16  ;;  %2690 = vxpose.xlu0.b32.end [16/16] (narrow) %v2530_v59, 16 }
 0x244   :  { %v2548_v25 = vmax.f32 %v2170_v19, 0.0 }
 0x245   :  { %v2547_v21 = vmax.f32 %v2165_v16, 0.0  ;;  %v3742_v22 = vpop.f32.mrb[66].mxu1 }
 0x246   :  { %v2174_v23 = vpop.f32.mrb[67].mxu1  ;;  %v2180_v33 = vadd.f32 %v3742_v22, %v4690_v31 }
 0x247   :  { %2715 = vxpose.xlu1.b32.cont [9/16] (narrow) %v2539_v18, 16  ;;  %2739 = vxpose.xlu0.b32.start [1/16] (narrow) %v2547_v21, 16  ;;  %v2175_v26 = vadd.f32 %v4690_v31, %v2174_v23  ;;  %v2627_v3 = vpop.trf.xlu0 }
 0x248   :  { %v2550_v38 = vmax.f32 %v2180_v33, 0.0  ;;  %2867 = vst [vmem:[#allocation2] sm:$0xff] %v2627_v3 }
 0x249   :  { %v3745_v27 = vpop.f32.mrb[68].mxu1  ;;  %v2549_v34 = vmax.f32 %v2175_v26, 0.0 }
 0x24a   :  { %v2184_v28 = vpop.f32.mrb[69].mxu1  ;;  %v2190_v45 = vadd.f32 %v3745_v27, %v4690_v31 }
 0x24b   :  { %2716 = vxpose.xlu1.b32.cont [10/16] (narrow) %v2540_v20, 16  ;;  %2740 = vxpose.xlu0.b32.cont [2/16] (narrow) %v2548_v25, 16  ;;  %v2185_v39 = vadd.f32 %v4690_v31, %v2184_v28  ;;  %v2628_v11 = vpop.trf.xlu0 }
 0x24c   :  { %v2552_v50 = vmax.f32 %v2190_v45, 0.0  ;;  %2875 = vst [vmem:[#allocation2 + $0x40] sm:$0xff] %v2628_v11 }
 0x24d   :  { %v3748_v35 = vpop.f32.mrb[70].mxu1  ;;  %v2551_v46 = vmax.f32 %v2185_v39, 0.0 }
 0x24e   :  { %v2194_v36 = vpop.f32.mrb[71].mxu1  ;;  %v2200_v56 = vadd.f32 %v3748_v35, %v4690_v31 }
 0x24f   :  { %2717 = vxpose.xlu1.b32.cont [11/16] (narrow) %v2541_v32, 16  ;;  %2741 = vxpose.xlu0.b32.cont [3/16] (narrow) %v2549_v34, 16  ;;  %v2195_v51 = vadd.f32 %v4690_v31, %v2194_v36 }
 0x250   :  { %v2554_v61 = vmax.f32 %v2200_v56, 0.0 }
 0x251   :  { %v3751_v40 = vpop.f32.mrb[72].mxu1  ;;  %v2553_v57 = vmax.f32 %v2195_v51, 0.0 }
 0x252   :  { %v2204_v42 = vpop.f32.mrb[73].mxu1  ;;  %v2210_v4 = vadd.f32 %v3751_v40, %v4690_v31 }
 0x253   :  { %2718 = vxpose.xlu1.b32.cont [12/16] (narrow) %v2542_v30, 16  ;;  %2742 = vxpose.xlu0.b32.cont [4/16] (narrow) %v2550_v38, 16  ;;  %v2205_v63 = vadd.f32 %v4690_v31, %v2204_v42 }
 0x254   :  { %v2556_v59 = vmax.f32 %v2210_v4, 0.0 }
 0x255   :  { %v3754_v47 = vpop.f32.mrb[74].mxu1  ;;  %v2555_v5 = vmax.f32 %v2205_v63, 0.0 }
 0x256   :  { %v2214_v48 = vpop.f32.mrb[75].mxu1  ;;  %v2220_v18 = vadd.f32 %v3754_v47, %v4690_v31 }
 0x257   :  { %2719 = vxpose.xlu1.b32.cont [13/16] (narrow) %v2543_v43, 16  ;;  %2743 = vxpose.xlu0.b32.cont [5/16] (narrow) %v2551_v46, 16  ;;  %v2215_v12 = vadd.f32 %v4690_v31, %v2214_v48 }
 0x258   :  { %v2558_v24 = vmax.f32 %v2220_v18, 0.0 }
 0x259   :  { %v3757_v52 = vpop.f32.mrb[76].mxu1  ;;  %v2557_v19 = vmax.f32 %v2215_v12, 0.0 }
 0x25a   :  { %v2224_v53 = vpop.f32.mrb[77].mxu1  ;;  %v2230_v32 = vadd.f32 %v3757_v52, %v4690_v31 }
 0x25b   :  { %2720 = vxpose.xlu1.b32.cont [14/16] (narrow) %v2544_v41, 16  ;;  %2744 = vxpose.xlu0.b32.cont [6/16] (narrow) %v2552_v50, 16  ;;  %v2225_v25 = vadd.f32 %v4690_v31, %v2224_v53 }
 0x25c   :  { %v2560_v37 = vmax.f32 %v2230_v32, 0.0 }
 0x25d   :  { %v4825_v58 = vpop.f32.mrb[78].mxu1  ;;  %v2559_v33 = vmax.f32 %v2225_v25, 0.0 }
 0x25e   :  { %v2234_v60 = vpop.f32.mrb[79].mxu1  ;;  %v2240_v43 = vadd.f32 %v4825_v58, %v4690_v31 }
 0x25f   :  { %2721 = vxpose.xlu1.b32.cont [15/16] (narrow) %v2545_v55, 16  ;;  %2745 = vxpose.xlu0.b32.cont [7/16] (narrow) %v2553_v57, 16  ;;  %v2235_v38 = vadd.f32 %v4690_v31, %v2234_v60 }
 0x260   :  { %v2562_v49 = vmax.f32 %v2240_v43, 0.0 }
 0x261   :  { %v3763_v0 = vpop.f32.mrb[80].mxu1  ;;  %v2561_v45 = vmax.f32 %v2235_v38, 0.0  ;;  %v4868_v38 = vld [vmem:[%s4911_s4] ss:$0 sm:$0xff]  ;;  %s3886_s4 = smov [#allocation2]  }
 0x262   :  { %v2244_v1 = vpop.f32.mrb[81].mxu1  ;;  %v2250_v6 = vadd.f32 %v3763_v0, %v4690_v31  ;;  %s2888_s12 = sshll.u32 %s3886_s4, 4  ;;  %s2889_s12 = int_to_ptr.vmem [resolvable:$true] %s2888_s12 }
 0x263   :  { %v2245_v2 = vadd.f32 %v4690_v31, %v2244_v1  ;;  %2722 = vxpose.xlu1.b32.end [16/16] (narrow) %v2546_v62, 16  ;;  %2746 = vxpose.xlu0.b32.cont [8/16] (narrow) %v2554_v61, 16  ;;  %s3862_s13 = scalar_lea.vmem %s2889_s12, 2048  ;;  %p3867_p1 = scmp.lt.s32.totalorder %s2889_s12, %s2889_s12 }
 0x264   :  { %v2564_v13 = vmax.f32 %v2250_v6, 0.0  ;;  %p3863_p0 = scmp.ne.s32.totalorder %s2889_s12, %s3862_s13  ;;  %p3868_p2 = scmp.lt.s32.totalorder %s3862_s13, %s3862_s13 }
 0x265   :  { %v2563_v7 = vmax.f32 %v2245_v2, 0.0  ;;  %v3766_v8 = vpop.f32.mrb[82].mxu1 }
 0x266   :  { %v2254_v9 = vpop.f32.mrb[83].mxu1  ;;  %v2260_v21 = vadd.f32 %v3766_v8, %v4690_v31  ;;  %p3869_p3 = por %p3868_p2, %p3867_p1 }
 0x267   :  { %2771 = vxpose.xlu1.b32.start [1/16] (narrow) %v2563_v7, 16  ;;  %2747 = vxpose.xlu0.b32.cont [9/16] (narrow) %v2555_v5, 16  ;;  %v2659_v10 = vpop.trf.xlu1  ;;  %v2255_v14 = vadd.f32 %v4690_v31, %v2254_v9 }
 0x268   :  { %2868 = vst [vmem:[#allocation2 + $0x8] sm:$0xff] %v2659_v10  ;;  %v2566_v26 = vmax.f32 %v2260_v21, 0.0  ;;  %p3870_p4 = pnand %p3869_p3, %p3863_p0 }
 0x269   :  { %v3769_v15 = vpop.f32.mrb[84].mxu1  ;;  %v2565_v22 = vmax.f32 %v2255_v14, 0.0 }
 0x26a   :  { %v2264_v16 = vpop.f32.mrb[85].mxu1  ;;  %v2270_v34 = vadd.f32 %v3769_v15, %v4690_v31 }
 0x26b   :  { %2772 = vxpose.xlu1.b32.cont [2/16] (narrow) %v2564_v13, 16  ;;  %2748 = vxpose.xlu0.b32.cont [10/16] (narrow) %v2556_v59, 16  ;;  %v2660_v17 = vpop.trf.xlu1  ;;  %v2265_v27 = vadd.f32 %v4690_v31, %v2264_v16 }
 0x26c   :  { %2876 = vst [vmem:[#allocation2 + $0x48] sm:$0xff] %v2660_v17  ;;  %v2568_v39 = vmax.f32 %v2270_v34, 0.0 }
 0x26d   :  { %v3772_v23 = vpop.f32.mrb[86].mxu1  ;;  %v2567_v35 = vmax.f32 %v2265_v27, 0.0 }
 0x26e   :  { %v2274_v20 = vpop.f32.mrb[87].mxu1  ;;  %v2280_v46 = vadd.f32 %v3772_v23, %v4690_v31 }
 0x26f   :  { %2773 = vxpose.xlu1.b32.cont [3/16] (narrow) %v2565_v22, 16  ;;  %2749 = vxpose.xlu0.b32.cont [11/16] (narrow) %v2557_v19, 16  ;;  %v2275_v40 = vadd.f32 %v4690_v31, %v2274_v20 }
 0x270   :  { %v2570_v50 = vmax.f32 %v2280_v46, 0.0 }
 0x271   :  { %v3775_v28 = vpop.f32.mrb[88].mxu1  ;;  %v2569_v47 = vmax.f32 %v2275_v40, 0.0 }
 0x272   :  { %v2284_v29 = vpop.f32.mrb[89].mxu1  ;;  %v2290_v55 = vadd.f32 %v3775_v28, %v4690_v31 }
 0x273   :  { %2774 = vxpose.xlu1.b32.cont [4/16] (narrow) %v2566_v26, 16  ;;  %2750 = vxpose.xlu0.b32.cont [12/16] (narrow) %v2558_v24, 16  ;;  %v2285_v51 = vadd.f32 %v4690_v31, %v2284_v29 }
 0x274   :  { %v2572_v63 = vmax.f32 %v2290_v55, 0.0 }
 0x275   :  { %v3778_v36 = vpop.f32.mrb[90].mxu1  ;;  %v2571_v56 = vmax.f32 %v2285_v51, 0.0 }
 0x276   :  { %v2294_v30 = vpop.f32.mrb[91].mxu1  ;;  %v2300_v6 = vadd.f32 %v3778_v36, %v4690_v31 }
 0x277   :  { %2775 = vxpose.xlu1.b32.cont [5/16] (narrow) %v2567_v35, 16  ;;  %2751 = vxpose.xlu0.b32.cont [13/16] (narrow) %v2559_v33, 16  ;;  %v2295_v0 = vadd.f32 %v4690_v31, %v2294_v30 }
 0x278   :  { %v2574_v59 = vmax.f32 %v2300_v6, 0.0 }
 0x279   :  { %v3781_v42 = vpop.f32.mrb[92].mxu1  ;;  %v2573_v7 = vmax.f32 %v2295_v0, 0.0 }
 0x27a   :  { %v2304_v44 = vpop.f32.mrb[93].mxu1  ;;  %v2310_v17 = vadd.f32 %v3781_v42, %v4690_v31 }
 0x27b   :  { %2776 = vxpose.xlu1.b32.cont [6/16] (narrow) %v2568_v39, 16  ;;  %2752 = vxpose.xlu0.b32.cont [14/16] (narrow) %v2560_v37, 16  ;;  %v2305_v12 = vadd.f32 %v4690_v31, %v2304_v44 }
 0x27c   :  { %v2576_v20 = vmax.f32 %v2310_v17, 0.0 }
 0x27d   :  { %v4844_v48 = vpop.f32.mrb[94].mxu1  ;;  %v2575_v18 = vmax.f32 %v2305_v12, 0.0 }
 0x27e   :  { %v2314_v41 = vpop.f32.mrb[95].mxu1  ;;  %v2320_v29 = vadd.f32 %v4844_v48, %v4690_v31 }
 0x27f   :  { %2777 = vxpose.xlu1.b32.cont [7/16] (narrow) %v2569_v47, 16  ;;  %2753 = vxpose.xlu0.b32.cont [15/16] (narrow) %v2561_v45, 16  ;;  %v2315_v24 = vadd.f32 %v4690_v31, %v2314_v41 }
 0x280   :  { %v2578_v30 = vmax.f32 %v2320_v29, 0.0 }
 0x281   :  { %v3787_v52 = vpop.f32.mrb[96].mxu1  ;;  %v2577_v32 = vmax.f32 %v2315_v24, 0.0 }
 0x282   :  { %v2324_v53 = vpop.f32.mrb[97].mxu1  ;;  %v2330_v57 = vadd.f32 %v3787_v52, %v4690_v31 }
 0x283   :  { %v2325_v54 = vadd.f32 %v4690_v31, %v2324_v53  ;;  %2778 = vxpose.xlu1.b32.cont [8/16] (narrow) %v2570_v50, 16  ;;  %2754 = vxpose.xlu0.b32.end [16/16] (narrow) %v2562_v49, 16 }
 0x284   :  { %v2580_v1 = vmax.f32 %v2330_v57, 0.0 }
 0x285   :  { %v2579_v58 = vmax.f32 %v2325_v54, 0.0  ;;  %v3790_v60 = vpop.f32.mrb[98].mxu1 }
 0x286   :  { %v2334_v62 = vpop.f32.mrb[99].mxu1  ;;  %v2340_v8 = vadd.f32 %v3790_v60, %v4690_v31 }
 0x287   :  { %2779 = vxpose.xlu1.b32.cont [9/16] (narrow) %v2571_v56, 16  ;;  %2803 = vxpose.xlu0.b32.start [1/16] (narrow) %v2579_v58, 16  ;;  %v2691_v61 = vpop.trf.xlu0  ;;  %v2335_v2 = vadd.f32 %v4690_v31, %v2334_v62 }
 0x288   :  { %2869 = vst [vmem:[#allocation2 + $0x10] sm:$0xff] %v2691_v61  ;;  %v2582_v13 = vmax.f32 %v2340_v8, 0.0 }
 0x289   :  { %v3793_v3 = vpop.f32.mrb[100].mxu1  ;;  %v2581_v9 = vmax.f32 %v2335_v2, 0.0 }
 0x28a   :  { %v2344_v4 = vpop.f32.mrb[101].mxu1  ;;  %v2350_v19 = vadd.f32 %v3793_v3, %v4690_v31 }
 0x28b   :  { %2780 = vxpose.xlu1.b32.cont [10/16] (narrow) %v2572_v63, 16  ;;  %2804 = vxpose.xlu0.b32.cont [2/16] (narrow) %v2580_v1, 16  ;;  %v2692_v5 = vpop.trf.xlu0  ;;  %v2345_v14 = vadd.f32 %v4690_v31, %v2344_v4 }
 0x28c   :  { %2877 = vst [vmem:[#allocation2 + $0x50] sm:$0xff] %v2692_v5  ;;  %v2584_v25 = vmax.f32 %v2350_v19, 0.0 }
 0x28d   :  { %v3796_v10 = vpop.f32.mrb[102].mxu1  ;;  %v2583_v21 = vmax.f32 %v2345_v14, 0.0 }
 0x28e   :  { %v2354_v11 = vpop.f32.mrb[103].mxu1  ;;  %v2360_v33 = vadd.f32 %v3796_v10, %v4690_v31 }
 0x28f   :  { %2781 = vxpose.xlu1.b32.cont [11/16] (narrow) %v2573_v7, 16  ;;  %2805 = vxpose.xlu0.b32.cont [3/16] (narrow) %v2581_v9, 16  ;;  %v2355_v26 = vadd.f32 %v4690_v31, %v2354_v11 }
 0x290   :  { %v2586_v37 = vmax.f32 %v2360_v33, 0.0 }
 0x291   :  { %v3799_v15 = vpop.f32.mrb[104].mxu1  ;;  %v2585_v34 = vmax.f32 %v2355_v26, 0.0 }
 0x292   :  { %v2364_v16 = vpop.f32.mrb[105].mxu1  ;;  %v2370_v31 = vadd.f32 %v4868_v38, %v3799_v15 }
 0x293   :  { %2782 = vxpose.xlu1.b32.cont [12/16] (narrow) %v2574_v59, 16  ;;  %2806 = vxpose.xlu0.b32.cont [4/16] (narrow) %v2582_v13, 16  ;;  %v2365_v39 = vadd.f32 %v4868_v38, %v2364_v16 }
 0x294   :  { %v2588_v49 = vmax.f32 %v2370_v31, 0.0 }
 0x295   :  { %v3802_v22 = vpop.f32.mrb[106].mxu1  ;;  %v2587_v43 = vmax.f32 %v2365_v39, 0.0 }
 0x296   :  { %v2374_v23 = vpop.f32.mrb[107].mxu1  ;;  %v2380_v56 = vadd.f32 %v4868_v38, %v3802_v22 }
 0x297   :  { %2783 = vxpose.xlu1.b32.cont [13/16] (narrow) %v2575_v18, 16  ;;  %2807 = vxpose.xlu0.b32.cont [5/16] (narrow) %v2583_v21, 16  ;;  %v2375_v50 = vadd.f32 %v4868_v38, %v2374_v23 }
 0x298   :  { %v2590_v63 = vmax.f32 %v2380_v56, 0.0 }
 0x299   :  { %v3805_v27 = vpop.f32.mrb[108].mxu1  ;;  %v2589_v57 = vmax.f32 %v2375_v50, 0.0 }
 0x29a   :  { %v2384_v28 = vpop.f32.mrb[109].mxu1  ;;  %v2390_v5 = vadd.f32 %v4868_v38, %v3805_v27 }
 0x29b   :  { %2784 = vxpose.xlu1.b32.cont [14/16] (narrow) %v2576_v20, 16  ;;  %2808 = vxpose.xlu0.b32.cont [6/16] (narrow) %v2584_v25, 16  ;;  %v2385_v0 = vadd.f32 %v4868_v38, %v2384_v28 }
 0x29c   :  { %v2592_v11 = vmax.f32 %v2390_v5, 0.0 }
 0x29d   :  { %v4863_v35 = vpop.f32.mrb[110].mxu1  ;;  %v2591_v6 = vmax.f32 %v2385_v0, 0.0 }
 0x29e   :  { %v2394_v36 = vpop.f32.mrb[111].mxu1  ;;  %v2400_v16 = vadd.f32 %v4868_v38, %v4863_v35 }
 0x29f   :  { %2785 = vxpose.xlu1.b32.cont [15/16] (narrow) %v2577_v32, 16  ;;  %2809 = vxpose.xlu0.b32.cont [7/16] (narrow) %v2585_v34, 16  ;;  %v2395_v59 = vadd.f32 %v4868_v38, %v2394_v36 }
 0x2a0   :  { %v2594_v23 = vmax.f32 %v2400_v16, 0.0 }
 0x2a1   :  { %v3811_v40 = vpop.f32.mrb[112].mxu1  ;;  %v2593_v17 = vmax.f32 %v2395_v59, 0.0 }
 0x2a2   :  { %v2404_v42 = vpop.f32.mrb[113].mxu1  ;;  %v2410_v45 = vadd.f32 %v4868_v38, %v3811_v40 }
 0x2a3   :  { %v2405_v44 = vadd.f32 %v4868_v38, %v2404_v42  ;;  %2786 = vxpose.xlu1.b32.end [16/16] (narrow) %v2578_v30, 16  ;;  %2810 = vxpose.xlu0.b32.cont [8/16] (narrow) %v2586_v37, 16 }
 0x2a4   :  { %v2596_v51 = vmax.f32 %v2410_v45, 0.0 }
 0x2a5   :  { %v2595_v46 = vmax.f32 %v2405_v44, 0.0  ;;  %v3814_v47 = vpop.f32.mrb[114].mxu1 }
 0x2a6   :  { %v2414_v48 = vpop.f32.mrb[115].mxu1  ;;  %v2420_v58 = vadd.f32 %v4868_v38, %v3814_v47 }
 0x2a7   :  { %2835 = vxpose.xlu1.b32.start [1/16] (narrow) %v2595_v46, 16  ;;  %2811 = vxpose.xlu0.b32.cont [9/16] (narrow) %v2587_v43, 16  ;;  %v2723_v41 = vpop.trf.xlu1  ;;  %v2415_v52 = vadd.f32 %v4868_v38, %v2414_v48 }
 0x2a8   :  { %2870 = vst [vmem:[#allocation2 + $0x18] sm:$0xff] %v2723_v41  ;;  %v2598_v1 = vmax.f32 %v2420_v58, 0.0 }
 0x2a9   :  { %v3817_v53 = vpop.f32.mrb[116].mxu1  ;;  %v2597_v60 = vmax.f32 %v2415_v52, 0.0 }
 0x2aa   :  { %v2424_v54 = vpop.f32.mrb[117].mxu1  ;;  %v2430_v7 = vadd.f32 %v4868_v38, %v3817_v53 }
 0x2ab   :  { %2836 = vxpose.xlu1.b32.cont [2/16] (narrow) %v2596_v51, 16  ;;  %2812 = vxpose.xlu0.b32.cont [10/16] (narrow) %v2588_v49, 16  ;;  %v2724_v55 = vpop.trf.xlu1  ;;  %v2425_v2 = vadd.f32 %v4868_v38, %v2424_v54 }
 0x2ac   :  { %2878 = vst [vmem:[#allocation2 + $0x58] sm:$0xff] %v2724_v55  ;;  %v2600_v12 = vmax.f32 %v2430_v7, 0.0 }
 0x2ad   :  { %v3820_v62 = vpop.f32.mrb[118].mxu1  ;;  %v2599_v8 = vmax.f32 %v2425_v2, 0.0 }
 0x2ae   :  { %v2434_v61 = vpop.f32.mrb[119].mxu1  ;;  %v2440_v18 = vadd.f32 %v4868_v38, %v3820_v62 }
 0x2af   :  { %2837 = vxpose.xlu1.b32.cont [3/16] (narrow) %v2597_v60, 16  ;;  %2813 = vxpose.xlu0.b32.cont [11/16] (narrow) %v2589_v57, 16  ;;  %v2435_v13 = vadd.f32 %v4868_v38, %v2434_v61 }
 0x2b0   :  { %v2602_v20 = vmax.f32 %v2440_v18, 0.0 }
 0x2b1   :  { %v3823_v3 = vpop.f32.mrb[120].mxu1  ;;  %v2601_v19 = vmax.f32 %v2435_v13, 0.0 }
 0x2b2   :  { %v2444_v4 = vpop.f32.mrb[121].mxu1  ;;  %v2450_v25 = vadd.f32 %v4868_v38, %v3823_v3 }
 0x2b3   :  { %2838 = vxpose.xlu1.b32.cont [4/16] (narrow) %v2598_v1, 16  ;;  %2814 = vxpose.xlu0.b32.cont [12/16] (narrow) %v2590_v63, 16  ;;  %v2445_v24 = vadd.f32 %v4868_v38, %v2444_v4 }
 0x2b4   :  { %v2604_v28 = vmax.f32 %v2450_v25, 0.0 }
 0x2b5   :  { %v3826_v9 = vpop.f32.mrb[122].mxu1  ;;  %v2603_v26 = vmax.f32 %v2445_v24, 0.0 }
 0x2b6   :  { %v2454_v10 = vpop.f32.mrb[123].mxu1  ;;  %v2460_v33 = vadd.f32 %v4868_v38, %v3826_v9 }
 0x2b7   :  { %2839 = vxpose.xlu1.b32.cont [5/16] (narrow) %v2599_v8, 16  ;;  %2815 = vxpose.xlu0.b32.cont [13/16] (narrow) %v2591_v6, 16  ;;  %v2455_v29 = vadd.f32 %v4868_v38, %v2454_v10 }
 0x2b8   :  { %v2606_v35 = vmax.f32 %v2460_v33, 0.0 }
 0x2b9   :  { %v3829_v14 = vpop.f32.mrb[124].mxu1  ;;  %v2605_v34 = vmax.f32 %v2455_v29, 0.0 }
 0x2ba   :  { %v2464_v15 = vpop.f32.mrb[125].mxu1  ;;  %v2470_v30 = vadd.f32 %v4868_v38, %v3829_v14 }
 0x2bb   :  { %2840 = vxpose.xlu1.b32.cont [6/16] (narrow) %v2600_v12, 16  ;;  %2816 = vxpose.xlu0.b32.cont [14/16] (narrow) %v2592_v11, 16  ;;  %v2465_v36 = vadd.f32 %v4868_v38, %v2464_v15 }
 0x2bc   :  { %v2608_v39 = vmax.f32 %v2470_v30, 0.0 }
 0x2bd   :  { %v3832_v21 = vpop.f32.mrb[126].mxu1  ;;  %v2607_v37 = vmax.f32 %v2465_v36, 0.0 }
 0x2be   :  { %v2474_v22 = vpop.f32.mrb[127].mxu1  ;;  %v2480_v42 = vadd.f32 %v4868_v38, %v3832_v21 }
 0x2bf   :  { %2841 = vxpose.xlu1.b32.cont [7/16] (narrow) %v2601_v19, 16  ;;  %2817 = vxpose.xlu0.b32.cont [15/16] (narrow) %v2593_v17, 16  ;;  %v2475_v40 = vadd.f32 %v4868_v38, %v2474_v22 }
 0x2c0   :  { %v2610_v31 = vmax.f32 %v2480_v42, 0.0 }
 0x2c1   :  { %v2609_v44 = vmax.f32 %v2475_v40, 0.0 }
 0x2c3   :  { %2842 = vxpose.xlu1.b32.cont [8/16] (narrow) %v2602_v20, 16  ;;  %2818 = vxpose.xlu0.b32.end [16/16] (narrow) %v2594_v23, 16 }
 0x2c7   :  { %2843 = vxpose.xlu1.b32.cont [9/16] (narrow) %v2603_v26, 16  ;;  %v2755_v27 = vpop.trf.xlu0 }
 0x2c8   :  { %2871 = vst [vmem:[#allocation2 + $0x20] sm:$0xff] %v2755_v27 }
 0x2cb   :  { %2844 = vxpose.xlu1.b32.cont [10/16] (narrow) %v2604_v28, 16  ;;  %v2756_v32 = vpop.trf.xlu0 }
 0x2cc   :  { %2879 = vst [vmem:[#allocation2 + $0x60] sm:$0xff] %v2756_v32 }
 0x2cf   :  { %2845 = vxpose.xlu1.b32.cont [11/16] (narrow) %v2605_v34, 16 }
 0x2d3   :  { %2846 = vxpose.xlu1.b32.cont [12/16] (narrow) %v2606_v35, 16 }
 0x2d7   :  { %2847 = vxpose.xlu1.b32.cont [13/16] (narrow) %v2607_v37, 16 }
 0x2db   :  { %2848 = vxpose.xlu1.b32.cont [14/16] (narrow) %v2608_v39, 16 }
 0x2df   :  { %2849 = vxpose.xlu1.b32.cont [15/16] (narrow) %v2609_v44, 16 }
 0x2e3   :  { %2850 = vxpose.xlu1.b32.end [16/16] (narrow) %v2610_v31, 16 }
 0x2e7   :  { %v2787_v43 = vpop.trf.xlu1 }
 0x2e8   :  { %2872 = vst [vmem:[#allocation2 + $0x28] sm:$0xff] %v2787_v43 }
 0x2eb   :  { %v2788_v45 = vpop.trf.xlu1 }
 0x2ec   :  { %2880 = vst [vmem:[#allocation2 + $0x68] sm:$0xff] %v2788_v45 }
 0x307   :  { %v2819_v46 = vpop.trf.xlu0 }
 0x308   :  { %2873 = vst [vmem:[#allocation2 + $0x30] sm:$0xff] %v2819_v46 }
 0x30b   :  { %v2820_v47 = vpop.trf.xlu0 }
 0x30c   :  { %2881 = vst [vmem:[#allocation2 + $0x70] sm:$0xff] %v2820_v47 }
 0x327   :  { %v2851_v48 = vpop.trf.xlu1 }
 0x328   :  { %2874 = vst [vmem:[#allocation2 + $0x38] sm:$0xff] %v2851_v48 }
 0x32b   :  { %v2852_v41 = vpop.trf.xlu1 }
 0x32c   :  { %2882 = vst [vmem:[#allocation2 + $0x78] sm:$0xff] %v2852_v41 }
 0x32d   :  { %3873 = shalt.err (!%p3870_p4)
}
 0x32e   :  { %s3874_s1 = scalar_lea.hbm %s4912_s5, 2048 }
 0x32f   :  { %p3875_p5 = scmp.ne.s32.totalorder %s4912_s5, %s3874_s1  ;;  %p3878_p6 = scmp.lt.u32.totalorder %s3874_s1, %s4912_s5 }
 0x331   :  { %p3880_p7 = pnand %p3878_p6, %p3875_p5 }
 0x333   :  { %3883 = shalt.err (!%p3880_p7)
}
 0x334   :  { %s3887_s20 = smov 1024   ;;  %s3888_s21 = smov 64  }
 0x335   :  { %2894 = dma.vmem_to_hbm [thread:$0]  %s2889_s12, 2048, %s4912_s5, [#allocation3], %s3887_s20, %s3887_s20, %s3888_s21  }
 0x336   :  { %3884 = dma.done.wait [#allocation3], 2048  }
 0x337   :  { %3885 = vsyncadd [#allocation3], 4294965248 }
 0x338   :  { %2898 = vsyncpa [#allocation3], 1 }

</bundles_post_ra>
